<compile_context>
chip_gen: v7x
topology: tpu7x:2x2x1
jax: 0.10.0
libtpu: 0.0.40
codegen_flags: <defaults>
</compile_context>

<pallas_src>
import jax
import jax.numpy as jnp
import numpy as np
from jax.experimental import pallas as pl
from jax.experimental.pallas import tpu as pltpu

KSIZE = 3          # conv kernel size
PAD = KSIZE // 2   # "same" padding


def _skip_conv_kernel(x_ref, halo_ref, w_ref, b_ref, o_ref):
    """One (batch, time-tile) block per grid step (NCT layout, time on lanes).

    x_ref    : (1, C, Tt)   input tile (residual is folded into w[1] as +I)
    halo_ref : (1, 1, C, 2) [..., 0] = column just left of this tile,
                            [..., 1] = column just right (zeros at seq edges)
    w_ref    : (K, C, C)    bf16 conv taps as matmul matrices, w[1] has +I
    b_ref    : (C, 1)       bias (broadcast over time/lanes)
    o_ref    : (1, C, Tt)   output = conv(x) + bias + x
    """
    x = x_ref[0]                      # (C, Tt), input dtype
    halo = halo_ref[0, 0]             # (C, 2)
    C, Tt = x.shape

    # Shifted operands for the K=3 taps.  Interior lanes come from a cheap XLU
    # lane rotation; the two tile-boundary lanes come from the pre-gathered
    # halo columns.  One (1, Tt) lane iota is reused for both edges.
    lane = jax.lax.broadcasted_iota(jnp.int32, (1, Tt), 1)
    x_prev = jnp.where(lane == 0, halo[:, 0:1],
                       pltpu.roll(x, shift=1, axis=1))
    x_next = jnp.where(lane == Tt - 1, halo[:, 1:2],
                       pltpu.roll(x, shift=Tt - 1, axis=1))   # == roll by -1

    # Three bf16 MXU matmuls with f32 accumulation.  Contraction dim = C_in,
    # output lane dim = Tt (multiple of 128 -> dense, unmasked stores).
    mxu = jnp.bfloat16
    acc = jnp.dot(w_ref[1], x.astype(mxu),
                  preferred_element_type=jnp.float32)         # centre tap + residual (I)
    acc = acc + jnp.dot(w_ref[0], x_prev.astype(mxu),
                        preferred_element_type=jnp.float32)
    acc = acc + jnp.dot(w_ref[2], x_next.astype(mxu),
                        preferred_element_type=jnp.float32)

    o_ref[0] = (acc + b_ref[...].astype(jnp.float32)).astype(o_ref.dtype)


def skip_connection(x_nct, weight, bias, *, t_tile=4096):
    """x_nct: (N, C, T) PyTorch Conv1d layout.
    weight: (C_out, C_in, K) PyTorch Conv1d weight.  bias: (C_out,).
    Returns module(x) + x with shape (N, C, T)."""
    N, C, T = x_nct.shape
    c_out, c_in, K = weight.shape
    assert K == KSIZE and c_in == C and c_out == C
    assert C % 8 == 0, "C must be a multiple of the sublane tile (8)"
    t_tile = min(t_tile, T)
    assert t_tile % 128 == 0 and T % t_tile == 0, \
        "T must be a multiple of t_tile (multiple of 128)"
    J = T // t_tile

    # Tap-major weights with the residual folded into the centre tap, cast to
    # bf16 so the MXU runs at full rate (accumulation stays f32 in-kernel).
    w_koi = jnp.transpose(weight, (2, 0, 1)).astype(jnp.float32)   # (K, C_out, C_in)
    w_koi = w_koi.at[1].add(jnp.eye(C, dtype=jnp.float32))         # w1' = w1 + I
    w_koi = w_koi.astype(jnp.bfloat16)
    b_2d = bias.astype(jnp.float32)[:, None]                       # (C_out, 1)

    # Per-tile halo columns: left[j] = x[:, :, j*t_tile - 1], right[j] =
    # x[:, :, (j+1)*t_tile], zeros at the sequence edges.  2*J columns total
    # (negligible traffic); shaped (N, J, C, 2) so the last two block dims are
    # (C, 2) -> valid layout with a tiny per-tile DMA.
    zero_col = jnp.zeros((N, C, 1), x_nct.dtype)
    left = jnp.concatenate(
        [zero_col, x_nct[:, :, t_tile - 1::t_tile][:, :, :J - 1]], axis=2)   # (N, C, J)
    right = jnp.concatenate(
        [x_nct[:, :, t_tile::t_tile], zero_col], axis=2)                     # (N, C, J)
    halo = jnp.transpose(jnp.stack([left, right], axis=-1), (0, 2, 1, 3))    # (N, J, C, 2)

    # Scoped-VMEM budget: double-buffered x/out blocks + weights + halo/bias,
    # plus in-kernel f32/bf16 temporaries (x_prev, x_next, casts, acc), with
    # headroom.  Floored at 32 MiB (>= every generation's default) and capped
    # at v7x's 64 MiB physical VMEM.
    itemsize = jnp.dtype(x_nct.dtype).itemsize
    io_block = C * t_tile * itemsize
    w_bytes = KSIZE * C * C * 2
    temp_bytes = C * t_tile * (2 * itemsize + 3 * 2 + 4)
    computed = 4 * io_block + 2 * (w_bytes + C * 2 * itemsize + C * 4) \
        + temp_bytes + (4 << 20)
    vmem_limit = int(min(max(computed, 32 << 20), 64 << 20))

    return pl.pallas_call(
        _skip_conv_kernel,
        out_shape=jax.ShapeDtypeStruct((N, C, T), x_nct.dtype),
        grid_spec=pltpu.PrefetchScalarGridSpec(
            num_scalar_prefetch=0,
            grid=(N, J),
            in_specs=[
                pl.BlockSpec((1, C, t_tile), lambda b, j: (b, 0, j)),     # x tile
                pl.BlockSpec((1, 1, C, 2), lambda b, j: (b, j, 0, 0)),    # halo cols
                pl.BlockSpec((KSIZE, C, C), lambda b, j: (0, 0, 0)),      # weights
                pl.BlockSpec((C, 1), lambda b, j: (0, 0)),                # bias
            ],
            out_specs=pl.BlockSpec((1, C, t_tile), lambda b, j: (b, 0, j)),
        ),
        compiler_params=pltpu.CompilerParams(
            dimension_semantics=("parallel", "parallel"),
            vmem_limit_bytes=vmem_limit,
        ),
    )(x_nct, halo, w_koi, b_2d)


def _reference(x_nct, weight, bias):
    """Pure-JAX f32 reference: Conv1d(padding=1) + x, PyTorch semantics."""
    N, C, T = x_nct.shape
    xf = x_nct.astype(jnp.float32)
    xp = jnp.pad(xf, ((0, 0), (0, 0), (PAD, PAD)))             # (N, C, T+2)
    y = jnp.zeros((N, C, T), jnp.float32)
    for k in range(KSIZE):
        y = y + jnp.einsum("oi,nit->not",
                           weight[:, :, k].astype(jnp.float32),
                           xp[:, :, k:k + T],
                           precision=jax.lax.Precision.HIGHEST)
    y = y + bias.astype(jnp.float32)[None, :, None] + xf
    return y.astype(x_nct.dtype)


if __name__ == "__main__":
    key = jax.random.PRNGKey(0)
    kx, kw, kb = jax.random.split(key, 3)

    # Small but TPU-friendly shapes: channels on sublanes (128), time on lanes.
    # T=1024 with t_tile=256 exercises 4 time tiles + the halo path.
    N, C, T = 2, 128, 1024
    x = jax.random.normal(kx, (N, C, T), dtype=jnp.float32)

    # Deterministic synthetic Conv1d(C, C, 3, padding=1) parameters.
    fan_in = C * KSIZE
    weight = jax.random.normal(kw, (C, C, KSIZE), dtype=jnp.float32) / np.sqrt(fan_in)
    bias = jax.random.normal(kb, (C,), dtype=jnp.float32) * 0.1

    out = jax.block_until_ready(skip_connection(x, weight, bias, t_tile=256))
    ref = jax.block_until_ready(_reference(x, weight, bias))

    assert out.shape == x.shape
    # bf16 MXU path vs f32 reference -> loosened tolerance (128*3-deep bf16
    # contraction with f32 accumulation).
    np.testing.assert_allclose(np.asarray(out), np.asarray(ref), rtol=5e-2, atol=5e-2)
    print("KERNEL_OK")
</pallas_src>

<mosaic_0001>
module attributes {stable_mosaic.version = 11 : i64} {
  func.func @_skip_conv_kernel(%arg0: i32, %arg1: i32, %arg2: memref<1x128x256xf32, #tpu.memory_space<vmem>>, %arg3: memref<1x1x128x2xf32, #tpu.memory_space<vmem>>, %arg4: memref<3x128x128xbf16, #tpu.memory_space<vmem>>, %arg5: memref<128x1xf32, #tpu.memory_space<vmem>>, %arg6: memref<1x128x256xf32, #tpu.memory_space<vmem>>) attributes {dimension_semantics = [#tpu.dimension_semantics<parallel>, #tpu.dimension_semantics<parallel>], iteration_bounds = array<i64: 2, 4>, scalar_prefetch = 0 : i64, scratch_operands = 0 : i64, tpu.core_type = #tpu.core_type<tc>, window_params = [{transform_indices = @transform_0, window_bounds = array<i64: 1, 128, 256>}, {transform_indices = @transform_1, window_bounds = array<i64: 1, 1, 128, 2>}, {pipeline_mode = #tpu.pipeline_mode<synchronous>, transform_indices = @transform_2, window_bounds = array<i64: 3, 128, 128>}, {pipeline_mode = #tpu.pipeline_mode<synchronous>, transform_indices = @transform_3, window_bounds = array<i64: 128, 1>}, {transform_indices = @transform_4, window_bounds = array<i64: 1, 128, 256>}]} {
    %c0 = arith.constant 0 : index
    %c0_0 = arith.constant 0 : index
    %c0_1 = arith.constant 0 : index
    %0 = vector.load %arg2[%c0, %c0_0, %c0_1] : memref<1x128x256xf32, #tpu.memory_space<vmem>>, vector<1x128x256xf32>
    %1 = vector.shape_cast %0 : vector<1x128x256xf32> to vector<128x256xf32>
    %c0_2 = arith.constant 0 : index
    %c0_3 = arith.constant 0 : index
    %c0_4 = arith.constant 0 : index
    %c0_5 = arith.constant 0 : index
    %2 = vector.load %arg3[%c0_2, %c0_3, %c0_4, %c0_5] : memref<1x1x128x2xf32, #tpu.memory_space<vmem>>, vector<1x1x128x2xf32>
    %3 = vector.shape_cast %2 : vector<1x1x128x2xf32> to vector<128x2xf32>
    %4 = tpu.iota {dimensions = array<i32: 1>} : vector<1x256xi32>
    %c0_i32 = arith.constant 0 : i32
    %5 = vector.broadcast %c0_i32 : i32 to vector<1x256xi32>
    %6 = arith.cmpi eq, %4, %5 : vector<1x256xi32>
    %7 = vector.extract_strided_slice %3 {offsets = [0, 0], sizes = [128, 1], strides = [1, 1]} : vector<128x2xf32> to vector<128x1xf32>
    %c1_i32 = arith.constant 1 : i32
    %8 = tpu.dynamic_rotate %1 by %c1_i32 dim 1 : vector<128x256xf32>, i32 -> vector<128x256xf32>
    %9 = vector.shape_cast %6 : vector<1x256xi1> to vector<1x256xi1>
    %10 = vector.broadcast %9 : vector<1x256xi1> to vector<128x256xi1>
    %11 = vector.shape_cast %7 : vector<128x1xf32> to vector<128x1xf32>
    %12 = vector.broadcast %11 : vector<128x1xf32> to vector<128x256xf32>
    %13 = arith.select %10, %12, %8 : vector<128x256xi1>, vector<128x256xf32>
    %c255_i32 = arith.constant 255 : i32
    %14 = vector.broadcast %c255_i32 : i32 to vector<1x256xi32>
    %15 = arith.cmpi eq, %4, %14 : vector<1x256xi32>
    %16 = vector.extract_strided_slice %3 {offsets = [0, 1], sizes = [128, 1], strides = [1, 1]} : vector<128x2xf32> to vector<128x1xf32>
    %c255_i32_6 = arith.constant 255 : i32
    %17 = tpu.dynamic_rotate %1 by %c255_i32_6 dim 1 : vector<128x256xf32>, i32 -> vector<128x256xf32>
    %18 = vector.shape_cast %15 : vector<1x256xi1> to vector<1x256xi1>
    %19 = vector.broadcast %18 : vector<1x256xi1> to vector<128x256xi1>
    %20 = vector.shape_cast %16 : vector<128x1xf32> to vector<128x1xf32>
    %21 = vector.broadcast %20 : vector<128x1xf32> to vector<128x256xf32>
    %22 = arith.select %19, %21, %17 : vector<128x256xi1>, vector<128x256xf32>
    %c1 = arith.constant 1 : index
    %c0_7 = arith.constant 0 : index
    %c0_8 = arith.constant 0 : index
    %23 = vector.load %arg4[%c1, %c0_7, %c0_8] : memref<3x128x128xbf16, #tpu.memory_space<vmem>>, vector<1x128x128xbf16>
    %24 = vector.shape_cast %23 : vector<1x128x128xbf16> to vector<128x128xbf16>
    %25 = arith.truncf %1 : vector<128x256xf32> to vector<128x256xbf16>
    %cst = arith.constant dense<0.000000e+00> : vector<128x256xf32>
    %26 = tpu.matmul %24, %25, %cst {dimension_numbers = #tpu.dot_dimension_numbers<[1], [0], [0], [1], [0, 0, 1, 1], [], []>} : vector<128x128xbf16>, vector<128x256xbf16>, vector<128x256xf32> -> vector<128x256xf32>
    %c0_9 = arith.constant 0 : index
    %c0_10 = arith.constant 0 : index
    %c0_11 = arith.constant 0 : index
    %27 = vector.load %arg4[%c0_9, %c0_10, %c0_11] : memref<3x128x128xbf16, #tpu.memory_space<vmem>>, vector<1x128x128xbf16>
    %28 = vector.shape_cast %27 : vector<1x128x128xbf16> to vector<128x128xbf16>
    %29 = arith.truncf %13 : vector<128x256xf32> to vector<128x256xbf16>
    %cst_12 = arith.constant dense<0.000000e+00> : vector<128x256xf32>
    %30 = tpu.matmul %28, %29, %cst_12 {dimension_numbers = #tpu.dot_dimension_numbers<[1], [0], [0], [1], [0, 0, 1, 1], [], []>} : vector<128x128xbf16>, vector<128x256xbf16>, vector<128x256xf32> -> vector<128x256xf32>
    %31 = arith.addf %26, %30 : vector<128x256xf32>
    %c2 = arith.constant 2 : index
    %c0_13 = arith.constant 0 : index
    %c0_14 = arith.constant 0 : index
    %32 = vector.load %arg4[%c2, %c0_13, %c0_14] : memref<3x128x128xbf16, #tpu.memory_space<vmem>>, vector<1x128x128xbf16>
    %33 = vector.shape_cast %32 : vector<1x128x128xbf16> to vector<128x128xbf16>
    %34 = arith.truncf %22 : vector<128x256xf32> to vector<128x256xbf16>
    %cst_15 = arith.constant dense<0.000000e+00> : vector<128x256xf32>
    %35 = tpu.matmul %33, %34, %cst_15 {dimension_numbers = #tpu.dot_dimension_numbers<[1], [0], [0], [1], [0, 0, 1, 1], [], []>} : vector<128x128xbf16>, vector<128x256xbf16>, vector<128x256xf32> -> vector<128x256xf32>
    %36 = arith.addf %31, %35 : vector<128x256xf32>
    %c0_16 = arith.constant 0 : index
    %c0_17 = arith.constant 0 : index
    %37 = vector.load %arg5[%c0_16, %c0_17] : memref<128x1xf32, #tpu.memory_space<vmem>>, vector<128x1xf32>
    %38 = vector.broadcast %37 : vector<128x1xf32> to vector<128x256xf32>
    %39 = arith.addf %36, %38 : vector<128x256xf32>
    %c0_18 = arith.constant 0 : index
    %c0_19 = arith.constant 0 : index
    %c0_20 = arith.constant 0 : index
    %40 = vector.load %arg6[%c0_18, %c0_19, %c0_20] : memref<1x128x256xf32, #tpu.memory_space<vmem>>, vector<1x128x256xf32>
    %41 = vector.shape_cast %40 : vector<1x128x256xf32> to vector<128x256xf32>
    %42 = vector.shape_cast %39 : vector<128x256xf32> to vector<1x128x256xf32>
    tpu.vector_store %arg6[%c0_18, %c0_19, %c0_20], %42 {strides = array<i32>} : memref<1x128x256xf32, #tpu.memory_space<vmem>>, vector<1x128x256xf32>,
    return
  }
  func.func @transform_0(%arg0: i32, %arg1: i32) -> (i32, i32, i32) {
    %c0_i32 = arith.constant 0 : i32
    %c0_i32_0 = arith.constant 0 : i32
    return %arg0, %c0_i32, %arg1 : i32, i32, i32
  }
  func.func @transform_1(%arg0: i32, %arg1: i32) -> (i32, i32, i32, i32) {
    %c0_i32 = arith.constant 0 : i32
    %c0_i32_0 = arith.constant 0 : i32
    %c0_i32_1 = arith.constant 0 : i32
    return %arg0, %arg1, %c0_i32, %c0_i32_0 : i32, i32, i32, i32
  }
  func.func @transform_2(%arg0: i32, %arg1: i32) -> (i32, i32, i32) {
    %c0_i32 = arith.constant 0 : i32
    %c0_i32_0 = arith.constant 0 : i32
    %c0_i32_1 = arith.constant 0 : i32
    %c0_i32_2 = arith.constant 0 : i32
    return %c0_i32, %c0_i32_0, %c0_i32_1 : i32, i32, i32
  }
  func.func @transform_3(%arg0: i32, %arg1: i32) -> (i32, i32) {
    %c0_i32 = arith.constant 0 : i32
    %c0_i32_0 = arith.constant 0 : i32
    %c0_i32_1 = arith.constant 0 : i32
    return %c0_i32, %c0_i32_0 : i32, i32
  }
  func.func @transform_4(%arg0: i32, %arg1: i32) -> (i32, i32, i32) {
    %c0_i32 = arith.constant 0 : i32
    %c0_i32_0 = arith.constant 0 : i32
    return %arg0, %c0_i32, %arg1 : i32, i32, i32
  }
}

</mosaic_0001>

<bundles_post_ra>
// kernel: tpu_custom_call.1
= control target key start
LH: loop header
LB: loop body
LE: loop exit
PB: predicated region body
PF: predicated region fallthrough
CT: control target
= control target key end

     0   :  { %9 = vsyncpa [#allocation3], 0  ;;  %s3217_s0 = inlined_call_operand.hbm [shape: f32[2,128,1024], index: 0, kind: input, shape index: {}]   ;;  %s3218_s1 = inlined_call_operand.vmem [shape: f32[2,4,128,2], index: 1, kind: input, shape index: {}]   ;;  %s3219_s2 = inlined_call_operand.vmem [shape: bf16[3,128,128], index: 2, kind: input, shape index: {}]   ;;  %s3220_s3 = inlined_call_operand.vmem [shape: f32[128,1], index: 3, kind: input, shape index: {}]   ;;  %s3221_s4 = inlined_call_operand.hbm [shape: f32[2,128,1024], index: 4, kind: output, shape index: {}]  }
   0x1   :  { %11 = vsyncpa [#allocation3 + $0x1], 0 }
   0x2   :  { %12 = vsyncpa [#allocation4], 0 }
   0x3   :  { %14 = vsyncpa [#allocation4 + $0x1], 0  ;;  %s2317_s15 = smov 0   ;;  %s2319_s16 = smov 0  }
   0x4   :  { %s2321_s17 = smov 0   ;;  %s2323_s18 = smov 0  }
   0x5   :  { %s2325_s19 = smov 0   ;;  %s2327_s20 = smov 0  }
   0x6   :  { %s2329_s21 = smov 0   ;;  %s2331_s22 = smov 0  }
   0x7 LB: > { %s1636_s23 = sadd.s32 4294967295, %s2278_s22   ;;  %s1637_s24 = sadd.s32 4294967294, %s2278_s22   ;;  %s2278_s22 = sphi %s2331_s22, %s20_s22   ;;  %s2274_s21 = sphi %s2329_s21, %s3240_s21   ;;  %s2270_s20 = sphi %s2327_s20, %s3239_s20   ;;  %s2266_s19 = sphi %s2325_s19, %s3238_s19   ;;  %s2262_s18 = sphi %s2323_s18, %s3237_s18   ;;  %s2258_s17 = sphi %s2321_s17, %s3236_s17   ;;  %s2254_s16 = sphi %s2319_s16, %s3235_s16   ;;  %s2250_s15 = sphi %s2317_s15, %s3234_s15  }
   0x8   : > { %s29_s25 = sadd.s32 1, %s2270_s20  ;;  %s32_s26 = sadd.s32 1, %s2274_s21 }
   0x9   : > { %p30_p0 = scmp.ge.s32.totalorder %s29_s25, 4  ;;  %s41_s27 = sadd.s32 1, %s2258_s17 }
   0xa   : > { %p48_p1 = scmp.ne.s32.totalorder %s2258_s17, %s2254_s16  ;;  %p49_p2 = scmp.eq.s32.totalorder %s2278_s22, 0 }
   0xb   : > { %s3242_s25 = smov (%p30_p0, %s29_s25), 0  ;;  %s3244_s26 = smov (!%p30_p0, %s32_s26), %s2274_s21 }
   0xc   : > { %3224 = sst [smem:[#allocation8_spill]] %s3242_s25  ;;  %s37_s28 = ssub.s32 %s2270_s20, %s3242_s25 }
   0xd   : > { %p2370_p3 = por %p49_p2, %p48_p1  ;;  %p34_p4 = scmp.ge.s32.totalorder %s3244_s26, 2 }
   0xe   : > { %p54_p5 = scmp.ne.s32.totalorder %s2254_s16, %s2250_s15  ;;  %p55_p6 = scmp.eq.s32.totalorder %s1636_s23, 0 }
   0xf   : > { %p150_p7 = scmp.eq.s32.totalorder %s1636_s23, 7  ;;  %s3246_s26 = smov (%p34_p4, %s3244_s26), 0 }
  0x10   : > { %p2378_p8 = por %p55_p6, %p54_p5  ;;  %s36_s6 = ssub.s32 %s2274_s21, %s3246_s26 }
  0x11   : > { %p2382_p9 = por %p150_p7, %p48_p1  ;;  %p156_p10 = scmp.eq.s32.totalorder %s1637_s24, 7 }
  0x12   : > { %s38_s7 = sor.u32 %s37_s28, %s36_s6  ;;  %p1804_p13 = scmp.lt.s32.totalorder %s2278_s22, 8 }
  0x13   : > { %s3227_s5 = scalar_select %p2382_p9, 1, 0 }
  0x14   : > { %p39_p11 = scmp.eq.s32.totalorder %s38_s7, 0  ;;  %p2388_p12 = por %p156_p10, %p54_p5 }
  0x15   : > { %s182_s9 = sand.u32 1, %s2258_s17   ;;  %s1641_s12 = sshll.u32 %s2270_s20, 1 }
  0x16   : > { %s3228_s8 = scalar_select %p2388_p12, 1, 0 }
  0x17   : > { %s2395_s10 = scalar_select %p39_p11, %s2258_s17, %s41_s27  }
  0x18   : > { %s1640_s11 = sshll.u32 %s182_s9, 8  ;;  %s1642_s13 = sshll.u32 %s2274_s21, 7 }
  0x19   : > { %s186_s14 = scalar_lea.vmem [#allocation2], %s1640_s11  ;;  %s192_s25 = sadd.s32 %s1642_s13, %s1641_s12 }
  0x1a   : > { %s195_s23 = sshll.u32 %s186_s14, 4  ;;  %s1643_s24 = sshll.u32 %s192_s25, 7  ;;  %s2399_s23 = int_to_ptr.vmem [resolvable:$true] %s195_s23 }
  0x1b   : > { %p2403_p0 = pnand %p1804_p13, %p2370_p3  ;;  %s2410_s27 = scalar_lea.hbm %s3217_s0, %s1643_s24 }
  0x1c   : > { %s2413_s11 = scalar_lea.sflag [#allocation3], %s182_s9  ;;  %s2150_s25 = scalar_lea.hbm %s2410_s27, 4096 }
  0x1d   : > { %p2151_p2 = scmp.ne.s32.totalorder %s2410_s27, %s2150_s25  ;;  %p2152_p3 = pneg %p2403_p0 }
  0x1e   : > { %s2155_s13 = scalar_lea.hbm %s3217_s0, 32768  ;;  %p2156_p6 = scmp.lt.u32.totalorder %s2410_s27, %s3217_s0 }
  0x1f   : > { %p2153_p4 = pnand %p2152_p3, %p2151_p2  ;;  %p2157_p7 = scmp.lt.u32.totalorder %s2155_s13, %s2150_s25 }
  0x20   : > { %p2159_p11 = scmp.lt.u32.totalorder %s2150_s25, %s2410_s27 }
  0x21   : > { %p2154_p5 = pneg %p2153_p4  ;;  %p2158_p10 = por %p2157_p7, %p2156_p6 }
  0x23   : > { %p2160_p13 = por %p2159_p11, %p2158_p10 }
  0x25   : > { %p2161_p1 = pnand %p2160_p13, %p2154_p5 }
  0x27   : > { %2164 = shalt.err (!%p2161_p1)
}
  0x28   : > { %s2165_s9 = scalar_lea.vmem %s2399_s23, 4096  ;;  %s2280_s6 = smov [#allocation2]  }
  0x29   : > { %p2166_p2 = scmp.ne.s32.totalorder %s2399_s23, %s2165_s9  ;;  %s2170_s7 = sshll.u32 %s2280_s6, 4  ;;  %s2171_s7 = int_to_ptr.vmem [resolvable:$false] %s2170_s7 }
  0x2a   : > { %s2172_s29 = scalar_lea.vmem %s2171_s7, 8192  ;;  %p2173_p9 = scmp.lt.s32.totalorder %s2399_s23, %s2171_s7 }
  0x2b   : > { %p2168_p4 = pnand %p2166_p2, %p2152_p3  ;;  %p2174_p6 = scmp.lt.s32.totalorder %s2172_s29, %s2165_s9 }
  0x2d   : > { %p2169_p12 = pneg %p2168_p4  ;;  %p2175_p7 = por %p2174_p6, %p2173_p9 }
  0x2f   : > { %p2176_p10 = pnand %p2175_p7, %p2169_p12 }
  0x31   : > { %2179 = shalt.err (!%p2176_p10)
}
  0x32   : > { %s2281_s25 = smov 1024   ;;  %s2282_s12 = smov 256  }
  0x33   : > { %s2283_s13 = smov 16   ;;  %p215_p1 = scmp.lt.s32.totalorder %s2278_s22, 9 }
  0x34   : > { %1799 = dma.hbm_to_vmem [thread:$0]  (!%p2403_p0), %s2410_s27, 4096, %s2399_s23, %s2413_s11, %s2281_s25, %s2282_s12, %s2283_s13  }
  0x35   : > { %p3230_p3 = scmp.ge.s32.totalorder %s2278_s22, 1 }
  0x37   : > { %p216_p5 = pnand %p3230_p3, %p215_p1 }
  0x38   : > { %s2445_s14 = sand.u32 (!%p216_p5), 1, %s2254_s16  }
  0x39   : > { %219 = sbr.rel (%p216_p5) target bundleno = 598 (0x256), region = 36  ;;  %s1645_s24 = sshll.u32 (!%p216_p5), %s2445_s14, 8 }
  0x3a   : > { %s222_s9 = scalar_lea.sflag (!%p216_p5), [#allocation3], %s2445_s14  ;;  %s2451_s6 = scalar_lea.vmem (!%p216_p5), [#allocation2], %s1645_s24 }
  0x40   : > { %2241 = dma.done.wait (%p2378_p8), %s222_s9, 4096  }
  0x41   : > { %2243 = vsyncadd (%p2378_p8), %s222_s9, 4294963200  ;;  %p260_p9 = scmp.lt.s32.totalorder %s2266_s19, 1  ;;  %v2284_v0 = vmov 0   ;;  %p262_p12 = scmp.lt.s32.totalorder %s2262_s18, 3  ;;  %v2466_v1 = vld [vmem:[%s2451_s6] sm:$0xff]  ;;  %v2469_v2 = vld [vmem:[%s2451_s6 + $0x10] sm:$0xff] }
  0x42   : > { %1895 = vset.pattern.permute.xlu0 %v2284_v0  ;;  %1916 = vset.pattern.permute.xlu1 %v2284_v0  ;;  %v2472_v3 = vld [vmem:[%s2451_s6 + $0x8] sm:$0xff]  ;;  %v2476_v4 = vpack.i.bf16 %v2469_v2, %v2466_v1  ;;  %v2484_v5 = vld [vmem:[%s2451_s6 + $0x18] sm:$0xff]  ;;  %s2285_s13 = smov 1   ;;  %v2499_v12 = vld [vmem:[%s2451_s6 + $0x20] sm:$0xff]  ;;  %v2597_v55 = vpack.c.bf16 %v2469_v2, %v2466_v1  ;;  %s2287_s9 = smov 127  }
  0x43   : > { %s261_s23 = scalar_select %p260_p9, %s2266_s19, 1  ;;  %881 = vmatprep.mubr.bf16.mxu1 %v2284_v0  ;;  %1042 = vmatprep.mubr.bf16.mxu0 %v2284_v0  ;;  %v2495_v10 = vpack.i.bf16 %v2484_v5, %v2472_v3  ;;  %v2502_v13 = vld [vmem:[%s2451_s6 + $0x30] sm:$0xff]  ;;  %v276_v21 = vld [vmem:[%s2451_s6 + $0x28] sm:$0xff]  ;;  %v278_v22 = vld [vmem:[%s2451_s6 + $0x38] sm:$0xff]  ;;  %v2588_v53 = vpack.c.bf16 %v2484_v5, %v2472_v3 }
  0x44   : > { %s263_s30 = scalar_select %p262_p12, %s2262_s18, 3  ;;  %1881 = vrot.lane.b32.xlu1 %v2476_v4, %s2285_s13  ;;  %v2513_v17 = vpack.i.bf16 %v2502_v13, %v2499_v12  ;;  %v280_v24 = vld [vmem:[%s2451_s6 + $0x48] sm:$0xff]  ;;  %v282_v25 = vld [vmem:[%s2451_s6 + $0x58] sm:$0xff]  ;;  %v2529_v26 = vpack.i.bf16 %v278_v22, %v276_v21  ;;  %v279_v27 = vld [vmem:[%s2451_s6 + $0x40] sm:$0xff]  ;;  %v2609_v61 = vpack.c.bf16 %v278_v22, %v276_v21  ;;  %v2617_v63 = vpack.c.bf16 %v2502_v13, %v2499_v12 }
  0x45   : > { %s1648_s28 = sshll.u32 %s261_s23, 6  ;;  %v281_v28 = vld [vmem:[%s2451_s6 + $0x50] sm:$0xff]  ;;  %v2534_v29 = vpack.i.bf16 %v282_v25, %v280_v24  ;;  %v2537_v30 = vld [vmem:[%s2451_s6 + $0x60] sm:$0xff]  ;;  %v284_v38 = vld [vmem:[%s2451_s6 + $0x68] sm:$0xff]  ;;  %1010 = vmatprep.subr.bf16.mxu0 %v2588_v53  ;;  %s3117_s25 = scalar_lea.vmem [#allocation5], %s1645_s24 }
  0x46   : > { %s1647_s27 = sshll.u32 %s263_s30, 4  ;;  %v2540_v31 = vld [vmem:[%s2451_s6 + $0x70] sm:$0xff]  ;;  %v2546_v34 = vpack.i.bf16 %v281_v28, %v279_v27  ;;  %v286_v39 = vld [vmem:[%s2451_s6 + $0x78] sm:$0xff]  ;;  %v288_v41 = vld [vmem:[%s2451_s6 + $0x88] sm:$0xff]  ;;  %1011 = vmatpush1.bf16.msra.mxu0 %v2597_v55  ;;  %s1707_s24 = sshll.u32 %s2262_s18, 1 }
  0x47   : > { %s266_s11 = sadd.s32 %s1648_s28, %s1647_s27  ;;  %v2554_v37 = vpack.i.bf16 %v2540_v31, %v2537_v30  ;;  %v290_v42 = vld [vmem:[%s2451_s6 + $0x98] sm:$0xff]  ;;  %v287_v44 = vld [vmem:[%s2451_s6 + $0x80] sm:$0xff]  ;;  %v289_v45 = vld [vmem:[%s2451_s6 + $0x90] sm:$0xff]  ;;  %v2571_v46 = vpack.i.bf16 %v286_v39, %v284_v38  ;;  %1012 = vmatprep.subr.bf16.mxu0 %v2609_v61  ;;  %v2647_v21 = vpack.c.bf16 %v2540_v31, %v2537_v30  ;;  %s1525_s18 = sshll.u32 %s3117_s25, 4  ;;  %s3160_s18 = int_to_ptr.vmem [resolvable:$true] %s1525_s18 }
  0x48   : > { %s1649_s7 = sshll.u32 %s266_s11, 3  ;;  %1886 = vrot.lane.b32.xlu1 %v2495_v10, %s2285_s13  ;;  %v2574_v47 = vld [vmem:[%s2451_s6 + $0xa0] sm:$0xff]  ;;  %v293_v48 = vld [vmem:[%s2451_s6 + $0xb0] sm:$0xff]  ;;  %v2578_v49 = vpack.i.bf16 %v290_v42, %v288_v41  ;;  %v2584_v52 = vpack.i.bf16 %v289_v45, %v287_v44  ;;  %v292_v59 = vld [vmem:[%s2451_s6 + $0xa8] sm:$0xff]  ;;  %s1510_s30 = scalar_lea.sflag [#allocation4], %s2445_s14 }
  0x49   : > { %s2481_s12 = scalar_lea.vmem %s3218_s1, %s1649_s7  ;;  %v2593_v54 = vpack.i.bf16 %v293_v48, %v2574_v47  ;;  %v294_v60 = vld [vmem:[%s2451_s6 + $0xb8] sm:$0xff]  ;;  %v296_v1 = vld [vmem:[%s2451_s6 + $0xc8] sm:$0xff]  ;;  %v295_v5 = vld [vmem:[%s2451_s6 + $0xc0] sm:$0xff]  ;;  %v2666_v31 = vpack.c.bf16 %v293_v48, %v2574_v47  ;;  %s2180_s28 = scalar_lea.vmem %s3160_s18, 4096 }
  0x4a   : > { %v303_v6 = vld [vmem:[%s2481_s12] sm:$0xff]  ;;  %v304_v7 = vld [vmem:[%s2481_s12 + $0x8] sm:$0xff]  ;;  %v305_v8 = vld [vmem:[%s2481_s12 + $0x10] sm:$0xff]  ;;  %v2623_v3 = vpack.i.bf16 %v294_v60, %v292_v59  ;;  %1013 = vmatpush1.bf16.msra.mxu0 %v2617_v63  ;;  %v2662_v30 = vpack.c.bf16 %v294_v60, %v292_v59  ;;  %p2181_p8 = scmp.ne.s32.totalorder %s3160_s18, %s2180_s28  ;;  %p3231_p0 = scmp.ne.s32.totalorder %s3227_s5, 0 }
  0x4b   : > { %v2491_v9 = vpack.i.bf16 %v304_v7, %v303_v6  ;;  %v306_v11 = vld [vmem:[%s2481_s12 + $0x18] sm:$0xff]  ;;  %v307_v15 = vld [vmem:[%s2481_s12 + $0x20] sm:$0xff]  ;;  %v308_v16 = vld [vmem:[%s2481_s12 + $0x28] sm:$0xff]  ;;  %v2628_v7 = vpack.c.bf16 %v282_v25, %v280_v24  ;;  %v2654_v25 = vpack.c.bf16 %v290_v42, %v288_v41  ;;  %s2288_s27 = smov [#allocation5]  }
  0x4c   : > { %v2505_v14 = vpack.i.bf16 %v306_v11, %v305_v8  ;;  %v309_v18 = vld [vmem:[%s2481_s12 + $0x30] sm:$0xff]  ;;  %v310_v19 = vld [vmem:[%s2481_s12 + $0x38] sm:$0xff]  ;;  %v2518_v20 = vpack.i.bf16 %v308_v16, %v307_v15  ;;  %1891 = vrot.lane.b32.xlu1 %v2513_v17, %s2285_s13  ;;  %v311_v32 = vld [vmem:[%s2481_s12 + $0x40] sm:$0xff]  ;;  %v2633_v11 = vpack.c.bf16 %v281_v28, %v279_v27  ;;  %v2286_v16 = vmov 1   ;;  %p2182_p11 = pnand %p2181_p8, %p3231_p0  ;;  %s2184_s11 = sshll.u32 %s2288_s27, 4  ;;  %s2185_s11 = int_to_ptr.vmem [resolvable:$false] %s2184_s11 }
  0x4d   : > { %1897 = vperm.xlu0 %1895, %v2491_v9   ;;  %v2524_v23 = vpack.i.bf16 %v310_v19, %v309_v18  ;;  %v312_v33 = vld [vmem:[%s2481_s12 + $0x48] sm:$0xff]  ;;  %v313_v35 = vld [vmem:[%s2481_s12 + $0x50] sm:$0xff]  ;;  %v314_v36 = vld [vmem:[%s2481_s12 + $0x58] sm:$0xff]  ;;  %1014 = vmatprep.subr.bf16.mxu0 %v2628_v7  ;;  %v2641_v18 = vpack.c.bf16 %v286_v39, %v284_v38  ;;  %v2657_v28 = vpack.c.bf16 %v289_v45, %v287_v44  ;;  %s2186_s7 = scalar_lea.vmem %s2185_s11, 8192  ;;  %p2187_p2 = scmp.lt.s32.totalorder %s3160_s18, %s2185_s11 }
  0x4e   : > { %v2560_v40 = vpack.i.bf16 %v312_v33, %v311_v32  ;;  %v2566_v43 = vpack.i.bf16 %v314_v36, %v313_v35  ;;  %v315_v50 = vld [vmem:[%s2481_s12 + $0x60] sm:$0xff]  ;;  %v316_v51 = vld [vmem:[%s2481_s12 + $0x68] sm:$0xff]  ;;  %v317_v56 = vld [vmem:[%s2481_s12 + $0x70] sm:$0xff]  ;;  %1015 = vmatpush1.bf16.msra.mxu0 %v2633_v11  ;;  %p2183_p13 = pneg %p2182_p11  ;;  %p2188_p4 = scmp.lt.s32.totalorder %s2186_s7, %s2180_s28 }
  0x4f   : > { %v318_v57 = vld [vmem:[%s2481_s12 + $0x78] sm:$0xff]  ;;  %v2604_v58 = vpack.i.bf16 %v316_v51, %v315_v50  ;;  %v297_v6 = vld [vmem:[%s2451_s6 + $0xd0] sm:$0xff]  ;;  %v299_v12 = vld [vmem:[%s2451_s6 + $0xe0] sm:$0xff]  ;;  %1016 = vmatprep.subr.bf16.mxu0 %v2641_v18  ;;  %s1708_s12 = sshll.u32 %s2266_s19, 7 }
  0x50   : > { %1918 = vperm.xlu1 %1916, %v2524_v23   ;;  %v2613_v62 = vpack.i.bf16 %v318_v57, %v317_v56  ;;  %v298_v2 = vld [vmem:[%s2451_s6 + $0xd8] sm:$0xff]  ;;  %v301_v13 = vld [vmem:[%s2451_s6 + $0xf0] sm:$0xff]  ;;  %v1982_v15 = vpack.i.bf16 %v297_v6, %v295_v5  ;;  %v300_v22 = vld [vmem:[%s2451_s6 + $0xe8] sm:$0xff]  ;;  %p2189_p6 = por %p2188_p4, %p2187_p2 }
  0x51   : > { %1902 = vperm.xlu0 %1895, %v2505_v14   ;;  %v2631_v8 = vpack.i.bf16 %v298_v2, %v296_v1  ;;  %v1998_v19 = vpack.i.bf16 %v301_v13, %v299_v12  ;;  %v302_v24 = vld [vmem:[%s2451_s6 + $0xf8] sm:$0xff]  ;;  %v2671_v32 = vpack.c.bf16 %v298_v2, %v296_v1 }
  0x52   : > { %1017 = vmatpush1.bf16.msra.mxu0 %v2647_v21  ;;  %v2003_v27 = vpack.i.bf16 %v302_v24, %v300_v22  ;;  %v2681_v33 = vpack.c.bf16 %v302_v24, %v300_v22  ;;  %p2190_p7 = pnand %p2189_p6, %p2183_p13 }
  0x53   : > { %1018 = vmatprep.subr.bf16.mxu0 %v2654_v25 }
  0x54   : > { %1928 = vrot.lane.b32.xlu1 %v2534_v29, %s2285_s13 }
  0x55   : > { %1907 = vperm.xlu0 %1895, %v2518_v20  }
  0x56   : > { %1019 = vmatpush1.bf16.msra.mxu0 %v2657_v28 }
  0x57   : > { %1020 = vmatprep.subr.bf16.mxu0 %v2662_v30 }
  0x58   : > { %1938 = vrot.lane.b32.xlu1 %v2554_v37, %s2285_s13 }
  0x59   : > { %1912 = vrot.lane.b32.xlu0 %v2529_v26, %s2285_s13 }
  0x5a   : > { %1021 = vmatpush1.bf16.msra.mxu0 %v2666_v31 }
  0x5b   : > { %1022 = vmatprep.subr.bf16.mxu0 %v2671_v32 }
  0x5c   : > { %1948 = vperm.xlu1 %1916, %v2566_v43  }
  0x5d   : > { %1923 = vrot.lane.b32.xlu0 %v2546_v34, %s2285_s13 }
  0x60   : > { %1958 = vrot.lane.b32.xlu1 %v2578_v49, %s2285_s13 }
  0x61   : > { %1933 = vperm.xlu0 %1895, %v2560_v40  }
  0x64   : > { %1968 = vrot.lane.b32.xlu1 %v2593_v54, %s2285_s13 }
  0x65   : > { %1943 = vrot.lane.b32.xlu0 %v2571_v46, %s2285_s13 }
  0x68   : > { %1978 = vperm.xlu1 %1916, %v2613_v62  }
  0x69   : > { %1953 = vrot.lane.b32.xlu0 %v2584_v52, %s2285_s13 }
  0x6c   : > { %1988 = vrot.lane.b32.xlu1 %v2631_v8, %s2285_s13 }
  0x6d   : > { %1963 = vperm.xlu0 %1895, %v2604_v58   ;;  %2023 = vset.pattern.permute.xlu1 %v2286_v16 }
  0x70   : > { %1999 = vrot.lane.b32.xlu1 %v1998_v19, %s2285_s13 }
  0x71   : > { %1973 = vrot.lane.b32.xlu0 %v2623_v3, %s2285_s13 }
  0x72   : > { %1992 = vset.pattern.permute.xlu0 %v2286_v16 }
  0x74   : > { %2004 = vrot.lane.b32.xlu1 %v2003_v27, %s2285_s13 }
  0x75   : > { %1983 = vrot.lane.b32.xlu0 %v1982_v15, %s2285_s13  ;;  %s1522_s13 = sadd.s32 %s1708_s12, %s1707_s24 }
  0x78   : > { %2014 = vrot.lane.b32.xlu1 %v2476_v4, %s2287_s9  ;;  %v2127_v4 = vld [vmem:[%s3219_s2 + $0x40] sm:$0xff]  }
  0x79   : > { %1994 = vperm.xlu0 %1992, %v2491_v9   ;;  %v2675_v9 = vpack.c.bf16 %v297_v6, %v295_v5 }
  0x7b   : > { %1023 = vmatpush1.bf16.msra.mxu0 %v2675_v9 }
  0x7c   : > { %2025 = vperm.xlu1 %2023, %v2518_v20   ;;  %1024 = vmatprep.subr.bf16.mxu0 %v2681_v33  ;;  %v2134_v20 = vld [vmem:[%s3219_s2 + $0x58] sm:$0xff]  }
  0x7d   : > { %2009 = vperm.xlu0 %1992, %v2505_v14   ;;  %v2684_v14 = vpack.c.bf16 %v301_v13, %v299_v12 }
  0x7f   : > { %1025 = vmatpush1.bf16.msra.mxu0 %v2684_v14 }
  0x80   : > { %2035 = vrot.lane.b32.xlu1 %v2529_v26, %s2287_s9 }
  0x81   : > { %2019 = vrot.lane.b32.xlu0 %v2495_v10, %s2287_s9  ;;  %v2130_v10 = vld [vmem:[%s3219_s2 + $0x48] sm:$0xff]  }
  0x82   : > { %1043 = vmatmul.mubr.bf16.vlgmr.msra.gmra.mrb[0].mxu0 %v2127_v4 }
  0x83   : > { %1052 = vmatprep.mubr.bf16.mxu0 %v2284_v0 }
  0x84   : > { %2045 = vrot.lane.b32.xlu1 %v2546_v34, %s2287_s9 }
  0x85   : > { %2030 = vrot.lane.b32.xlu0 %v2513_v17, %s2287_s9  ;;  %v2132_v17 = vld [vmem:[%s3219_s2 + $0x50] sm:$0xff]  }
  0x88   : > { %2055 = vperm.xlu1 %2023, %v2560_v40  }
  0x89   : > { %2040 = vperm.xlu0 %1992, %v2524_v23   ;;  %v319_v23 = vlaneseq }
  0x8a   : > { %1053 = vmatmul.mubr.bf16.gmra.mrb[4].mxu0 %v2130_v10 }
  0x8b   : > { %1062 = vmatprep.mubr.bf16.mxu0 %v2284_v0 }
  0x8c   : > { %2065 = vrot.lane.b32.xlu1 %v2571_v46, %s2287_s9 }
  0x8d   : > { %2050 = vrot.lane.b32.xlu0 %v2534_v29, %s2287_s9  ;;  %v2736_v29 = vand.u32 127, %v319_v23 }
  0x8f   : > { %vm388_vm0 = vcmp.lt.s32.totalorder %v2736_v29, 1  ;;  %vm322_vm1 = vcmp.eq.s32.totalorder %v2736_v29, 0  ;;  %vm603_vm2 = vcmp.lt.s32.totalorder %v2736_v29, 127 }
  0x90   : > { %2075 = vrot.lane.b32.xlu1 %v2584_v52, %s2287_s9 }
  0x91   : > { %2060 = vrot.lane.b32.xlu0 %v2554_v37, %s2287_s9 }
  0x92   : > { %1063 = vmatmul.mubr.bf16.gmra.mrb[8].mxu0 %v2132_v17 }
  0x93   : > { %1072 = vmatprep.mubr.bf16.mxu0 %v2284_v0 }
  0x94   : > { %2085 = vperm.xlu1 %2023, %v2604_v58  }
  0x95   : > { %2070 = vperm.xlu0 %1992, %v2566_v43  }
  0x98   : > { %2095 = vrot.lane.b32.xlu1 %v2623_v3, %s2287_s9 }
  0x99   : > { %2080 = vrot.lane.b32.xlu0 %v2578_v49, %s2287_s9  ;;  %2124 = vset.pattern.permute.xlu1 %v2284_v0 }
  0x9a   : > { %1073 = vmatmul.mubr.bf16.gmra.mrb[12].mxu0 %v2134_v20 }
  0x9b   : > { %1236 = vmatprep.mubr.bf16.mxu0 %v2284_v0 }
  0x9c   : > { %2105 = vrot.lane.b32.xlu1 %v1982_v15, %s2287_s9 }
  0x9d   : > { %2090 = vrot.lane.b32.xlu0 %v2593_v54, %s2287_s9 }
  0xa0   : > { %2115 = vrot.lane.b32.xlu1 %v1998_v19, %s2287_s9 }
  0xa1   : > { %2100 = vperm.xlu0 %1992, %v2613_v62  }
  0xa5   : > { %2110 = vrot.lane.b32.xlu0 %v2631_v8, %s2287_s9 }
  0xa6   : > { %2125 = vset.pattern.permute.xlu0 %v2284_v0 }
  0xa9   : > { %2120 = vrot.lane.b32.xlu0 %v2003_v27, %s2287_s9  ;;  %s1709_s9 = sshll.u32 %s1522_s13, 7 }
  0xaa   : > { %s3157_s23 = scalar_lea.hbm %s3221_s4, %s1709_s9 }
  0xb6   : > { %v1882_v26 = vpop.permute.xlu1 %1881 }
  0xb7   : > { %v1884_v35 = vunpack.i.h.bf16 %v1882_v26  ;;  %v1883_v36 = vunpack.i.l.bf16 %v1882_v26 }
  0xba   : > { %v1887_v34 = vpop.permute.xlu1 %1886 }
  0xbb   : > { %v1889_v37 = vunpack.i.h.bf16 %v1887_v34  ;;  %v1888_v38 = vunpack.i.l.bf16 %v1887_v34 }
  0xbd   : > { %v389_v39 = vsel %vm388_vm0, %v1883_v36, %v1888_v38  ;;  %v390_v40 = vsel %vm388_vm0, %v1884_v35, %v1889_v37  ;;  %v405_v45 = vsel %vm388_vm0, %v1888_v38, %v1883_v36  ;;  %v406_v46 = vsel %vm388_vm0, %v1889_v37, %v1884_v35 }
  0xbe   : > { %v786_v41 = vpack.c.bf16 %v390_v40, %v389_v39  ;;  %v1892_v51 = vpop.permute.xlu1 %1891 }
  0xbf   : > { %v1894_v57 = vunpack.i.h.bf16 %v1892_v51  ;;  %v1893_v58 = vunpack.i.l.bf16 %v1892_v51 }
  0xc0   : > { %849 = vmatprep.subr.bf16.mxu1 %v786_v41 }
  0xcc   : > { %v1898_v42 = vpop.permute.xlu0 %1897 }
  0xcd   : > { %v1900_v43 = vunpack.i.h.bf16 %v1898_v42  ;;  %v1899_v44 = vunpack.i.l.bf16 %v1898_v42 }
  0xcf   : > { %v505_v47 = vsel %vm322_vm1, %v1899_v44, %v405_v45  ;;  %v507_v48 = vsel %vm322_vm1, %v1900_v43, %v406_v46  ;;  %v1919_v54 = vpop.permute.xlu1 %1918 }
  0xd0   : > { %v1903_v49 = vpop.permute.xlu0 %1902  ;;  %v785_v50 = vpack.c.bf16 %v507_v48, %v505_v47  ;;  %v1921_v47 = vunpack.i.h.bf16 %v1919_v54  ;;  %v1920_v48 = vunpack.i.l.bf16 %v1919_v54 }
  0xd1   : > { %v1905_v62 = vunpack.i.h.bf16 %v1903_v49  ;;  %v1904_v1 = vunpack.i.l.bf16 %v1903_v49 }
  0xd2   : > { %850 = vmatpush1.bf16.msra.mxu1 %v785_v50 }
  0xd3   : > { %v1929_v2 = vpop.permute.xlu1 %1928 }
  0xd4   : > { %v1908_v52 = vpop.permute.xlu0 %1907  ;;  %v1931_v6 = vunpack.i.h.bf16 %v1929_v2  ;;  %v1930_v8 = vunpack.i.l.bf16 %v1929_v2 }
  0xd5   : > { %v1910_v10 = vunpack.i.h.bf16 %v1908_v52  ;;  %v1909_v17 = vunpack.i.l.bf16 %v1908_v52 }
  0xd7   : > { %v1939_v20 = vpop.permute.xlu1 %1938 }
  0xd8   : > { %v1913_v56 = vpop.permute.xlu0 %1912  ;;  %v1941_v43 = vunpack.i.h.bf16 %v1939_v20  ;;  %v1940_v44 = vunpack.i.l.bf16 %v1939_v20 }
  0xd9   : > { %v1915_v59 = vunpack.i.h.bf16 %v1913_v56  ;;  %v1914_v60 = vunpack.i.l.bf16 %v1913_v56 }
  0xdb   : > { %v407_v3 = vsel %vm388_vm0, %v1914_v60, %v1893_v58  ;;  %v408_v5 = vsel %vm388_vm0, %v1915_v59, %v1894_v57  ;;  %v391_v13 = vsel %vm388_vm0, %v1893_v58, %v1914_v60  ;;  %v392_v15 = vsel %vm388_vm0, %v1894_v57, %v1915_v59  ;;  %v2776_v41 = vpop.permute.xlu1 %1948 }
  0xdc   : > { %v1924_v12 = vpop.permute.xlu0 %1923  ;;  %v509_v16 = vsel %vm322_vm1, %v1904_v1, %v407_v3  ;;  %v511_v19 = vsel %vm322_vm1, %v1905_v62, %v408_v5  ;;  %v788_v27 = vpack.c.bf16 %v392_v15, %v391_v13 }
  0xdd   : > { %v1926_v22 = vunpack.i.h.bf16 %v1924_v12  ;;  %v1925_v24 = vunpack.i.l.bf16 %v1924_v12  ;;  %v787_v4 = vpack.c.bf16 %v511_v19, %v509_v16 }
  0xde   : > { %851 = vmatprep.subr.bf16.mxu1 %v788_v27  ;;  %v1349_v27 = vld [vmem:[%s3220_s3] sm:$0xff] }
  0xdf   : > { %v409_v23 = vsel %vm388_vm0, %v1930_v8, %v1925_v24  ;;  %v410_v26 = vsel %vm388_vm0, %v1931_v6, %v1926_v22  ;;  %852 = vmatpush1.bf16.msra.mxu1 %v787_v4  ;;  %v393_v35 = vsel %vm388_vm0, %v1925_v24, %v1930_v8  ;;  %v394_v36 = vsel %vm388_vm0, %v1926_v22, %v1931_v6  ;;  %v1959_v49 = vpop.permute.xlu1 %1958  ;;  %v1350_v4 = vld [vmem:[%s3220_s3 + $0x8] sm:$0xff] }
  0xe0   : > { %v1934_v34 = vpop.permute.xlu0 %1933  ;;  %v513_v37 = vsel %vm322_vm1, %v1909_v17, %v409_v23  ;;  %v515_v38 = vsel %vm322_vm1, %v1910_v10, %v410_v26  ;;  %v790_v39 = vpack.c.bf16 %v394_v36, %v393_v35  ;;  %v1961_v52 = vunpack.i.h.bf16 %v1959_v49  ;;  %1367 = vperm.xlu1 %2124, %v1349_v27   ;;  %1372 = vperm.xlu0 %2125, %v1350_v4   ;;  %v1351_v23 = vld [vmem:[%s3220_s3 + $0x10] sm:$0xff]  ;;  %v1353_v26 = vld [vmem:[%s3220_s3 + $0x20] sm:$0xff] }
  0xe1   : > { %v789_v40 = vpack.c.bf16 %v515_v38, %v513_v37  ;;  %v1960_v56 = vunpack.i.l.bf16 %v1959_v49  ;;  %v1936_v5 = vunpack.i.h.bf16 %v1934_v34  ;;  %v1935_v6 = vunpack.i.l.bf16 %v1934_v34  ;;  %v1359_v27 = vld [vmem:[%s3220_s3 + $0x50] sm:$0xff] }
  0xe2   : > { %853 = vmatprep.subr.bf16.mxu1 %v790_v39  ;;  %v1951_v39 = vunpack.i.h.bf16 %v2776_v41 }
  0xe3   : > { %854 = vmatpush1.bf16.msra.mxu1 %v789_v40  ;;  %v1969_v8 = vpop.permute.xlu1 %1968  ;;  %v1950_v40 = vunpack.i.l.bf16 %v2776_v41 }
  0xe4   : > { %v1944_v42 = vpop.permute.xlu0 %1943  ;;  %v1971_v35 = vunpack.i.h.bf16 %v1969_v8  ;;  %v1970_v36 = vunpack.i.l.bf16 %v1969_v8  ;;  %1377 = vperm.xlu1 %2124, %v1351_v23   ;;  %1387 = vperm.xlu0 %2125, %v1353_v26  }
  0xe5   : > { %v1946_v45 = vunpack.i.h.bf16 %v1944_v42  ;;  %v1945_v46 = vunpack.i.l.bf16 %v1944_v42 }
  0xe7   : > { %v411_v50 = vsel %vm388_vm0, %v1945_v46, %v1940_v44  ;;  %v412_v51 = vsel %vm388_vm0, %v1946_v45, %v1941_v43  ;;  %v395_v58 = vsel %vm388_vm0, %v1940_v44, %v1945_v46  ;;  %v396_v59 = vsel %vm388_vm0, %v1941_v43, %v1946_v45  ;;  %v2808_v20 = vpop.permute.xlu1 %1978  ;;  %v1352_v43 = vld [vmem:[%s3220_s3 + $0x18] sm:$0xff]  ;;  %v1355_v44 = vld [vmem:[%s3220_s3 + $0x30] sm:$0xff] }
  0xe8   : > { %v1954_v57 = vpop.permute.xlu0 %1953  ;;  %v517_v60 = vsel %vm322_vm1, %v1920_v48, %v411_v50  ;;  %v519_v54 = vsel %vm322_vm1, %v1921_v47, %v412_v51  ;;  %v792_v2 = vpack.c.bf16 %v396_v59, %v395_v58  ;;  %1382 = vperm.xlu1 %2124, %v1352_v43   ;;  %1397 = vperm.xlu0 %2125, %v1355_v44   ;;  %v1981_v26 = vunpack.i.h.bf16 %v2808_v20  ;;  %v1358_v44 = vld [vmem:[%s3220_s3 + $0x48] sm:$0xff] }
  0xe9   : > { %v1956_v62 = vunpack.i.h.bf16 %v1954_v57  ;;  %v1955_v1 = vunpack.i.l.bf16 %v1954_v57  ;;  %v791_v3 = vpack.c.bf16 %v519_v54, %v517_v60 }
  0xea   : > { %855 = vmatprep.subr.bf16.mxu1 %v792_v2  ;;  %v1357_v2 = vld [vmem:[%s3220_s3 + $0x40] sm:$0xff] }
  0xeb   : > { %v413_v12 = vsel %vm388_vm0, %v1960_v56, %v1955_v1  ;;  %v414_v13 = vsel %vm388_vm0, %v1961_v52, %v1956_v62  ;;  %856 = vmatpush1.bf16.msra.mxu1 %v791_v3  ;;  %v397_v16 = vsel %vm388_vm0, %v1955_v1, %v1960_v56  ;;  %v398_v19 = vsel %vm388_vm0, %v1956_v62, %v1961_v52  ;;  %v1989_v42 = vpop.permute.xlu1 %1988  ;;  %v1354_v1 = vld [vmem:[%s3220_s3 + $0x28] sm:$0xff] }
  0xec   : > { %v1964_v15 = vpop.permute.xlu0 %1963  ;;  %v521_v22 = vsel %vm322_vm1, %v1935_v6, %v413_v12  ;;  %v523_v24 = vsel %vm322_vm1, %v1936_v5, %v414_v13  ;;  %v794_v10 = vpack.c.bf16 %v398_v19, %v397_v16  ;;  %v1991_v47 = vunpack.i.h.bf16 %v1989_v42  ;;  %1392 = vperm.xlu1 %2124, %v1354_v1   ;;  %1407 = vperm.xlu0 %2125, %v1357_v2  }
  0xed   : > { %v793_v17 = vpack.c.bf16 %v523_v24, %v521_v22  ;;  %v1990_v48 = vunpack.i.l.bf16 %v1989_v42  ;;  %v1966_v60 = vunpack.i.h.bf16 %v1964_v15  ;;  %v1965_v54 = vunpack.i.l.bf16 %v1964_v15  ;;  %v1356_v24 = vld [vmem:[%s3220_s3 + $0x38] sm:$0xff] }
  0xee   : > { %857 = vmatprep.subr.bf16.mxu1 %v794_v10 }
  0xef   : > { %858 = vmatpush1.bf16.msra.mxu1 %v793_v17  ;;  %v2000_v62 = vpop.permute.xlu1 %1999 }
  0xf0   : > { %v1974_v34 = vpop.permute.xlu0 %1973  ;;  %v2002_v4 = vunpack.i.h.bf16 %v2000_v62  ;;  %v2001_v10 = vunpack.i.l.bf16 %v2000_v62  ;;  %1402 = vperm.xlu1 %2124, %v1356_v24   ;;  %1417 = vperm.xlu0 %2125, %v1359_v27  }
  0xf1   : > { %v1976_v37 = vunpack.i.h.bf16 %v1974_v34  ;;  %v1975_v38 = vunpack.i.l.bf16 %v1974_v34  ;;  %v1980_v34 = vunpack.i.l.bf16 %v2808_v20 }
  0xf3   : > { %v415_v45 = vsel %vm388_vm0, %v1975_v38, %v1970_v36  ;;  %v416_v46 = vsel %vm388_vm0, %v1976_v37, %v1971_v35  ;;  %v399_v41 = vsel %vm388_vm0, %v1970_v36, %v1975_v38  ;;  %v400_v50 = vsel %vm388_vm0, %v1971_v35, %v1976_v37  ;;  %v2005_v22 = vpop.permute.xlu1 %2004 }
  0xf4   : > { %v1984_v49 = vpop.permute.xlu0 %1983  ;;  %v525_v51 = vsel %vm322_vm1, %v1950_v40, %v415_v45  ;;  %v527_v52 = vsel %vm322_vm1, %v1951_v39, %v416_v46  ;;  %v796_v58 = vpack.c.bf16 %v400_v50, %v399_v41  ;;  %v2007_v17 = vunpack.i.h.bf16 %v2005_v22  ;;  %1412 = vperm.xlu1 %2124, %v1358_v44   ;;  %v1364_v44 = vld [vmem:[%s3220_s3 + $0x78] sm:$0xff] }
  0xf5   : > { %v1986_v56 = vunpack.i.h.bf16 %v1984_v49  ;;  %v1985_v57 = vunpack.i.l.bf16 %v1984_v49  ;;  %v795_v59 = vpack.c.bf16 %v527_v52, %v525_v51  ;;  %v2006_v23 = vunpack.i.l.bf16 %v2005_v22  ;;  %v1361_v49 = vld [vmem:[%s3220_s3 + $0x60] sm:$0xff]  ;;  %v1362_v22 = vld [vmem:[%s3220_s3 + $0x68] sm:$0xff] }
  0xf6   : > { %859 = vmatprep.subr.bf16.mxu1 %v796_v58  ;;  %v420_v37 = vsel %vm388_vm0, %v2007_v17, %v2002_v4  ;;  %v2869_v38 = vadd.s32 128, %v2736_v29  ;;  %v404_v20 = vsel %vm388_vm0, %v2002_v4, %v2007_v17  ;;  %v2126_v52 = vld [vmem:[%s3219_s2] sm:$0xff]   ;;  %1427 = vperm.xlu0 %2125, %v1361_v49   ;;  %v2137_v29 = vld [vmem:[%s3219_s2 + $0x30] sm:$0xff]  }
  0xf7   : > { %v417_v3 = vsel %vm388_vm0, %v1990_v48, %v1985_v57  ;;  %v418_v5 = vsel %vm388_vm0, %v1991_v47, %v1986_v56  ;;  %860 = vmatpush1.bf16.msra.mxu1 %v795_v59  ;;  %v401_v8 = vsel %vm388_vm0, %v1985_v57, %v1990_v48  ;;  %v402_v12 = vsel %vm388_vm0, %v1986_v56, %v1991_v47  ;;  %v2015_v39 = vpop.permute.xlu1 %2014  ;;  %v1360_v59 = vld [vmem:[%s3220_s3 + $0x58] sm:$0xff] }
  0xf8   : > { %v1995_v6 = vpop.permute.xlu0 %1994  ;;  %v529_v13 = vsel %vm322_vm1, %v1965_v54, %v417_v3  ;;  %v531_v15 = vsel %vm322_vm1, %v1966_v60, %v418_v5  ;;  %v798_v16 = vpack.c.bf16 %v402_v12, %v401_v8  ;;  %v419_v36 = vsel %vm388_vm0, %v2006_v23, %v2001_v10  ;;  %v1363_v5 = vld [vmem:[%s3220_s3 + $0x70] sm:$0xff]  ;;  %1422 = vperm.xlu1 %2124, %v1360_v59  }
  0xf9   : > { %v797_v19 = vpack.c.bf16 %v531_v15, %v529_v13  ;;  %v403_v40 = vsel %vm388_vm0, %v2001_v10, %v2006_v23  ;;  %v533_v42 = vsel %vm322_vm1, %v1980_v34, %v419_v36  ;;  %v535_v43 = vsel %vm322_vm1, %v1981_v26, %v420_v37 }
  0xfa   : > { %861 = vmatprep.subr.bf16.mxu1 %v798_v16  ;;  %v2017_v45 = vunpack.i.h.bf16 %v2015_v39  ;;  %v2016_v46 = vunpack.i.l.bf16 %v2015_v39  ;;  %v800_v47 = vpack.c.bf16 %v404_v20, %v403_v40  ;;  %v799_v48 = vpack.c.bf16 %v535_v43, %v533_v42  ;;  %1437 = vperm.xlu0 %2125, %v1363_v5  }
  0xfb   : > { %862 = vmatpush1.bf16.msra.mxu1 %v797_v19  ;;  %vm538_vm3 = vcmp.eq.s32.totalorder %v2869_v38, 255  ;;  %v1997_v56 = vunpack.i.h.bf16 %v1995_v6  ;;  %v1996_v57 = vunpack.i.l.bf16 %v1995_v6  ;;  %v2890_v58 = vpop.permute.xlu1 %2025  ;;  %v2138_v38 = vld [vmem:[%s3219_s2 + $0x88] sm:$0xff]  }
  0xfc   : > { %v2862_v35 = vpop.permute.xlu0 %2009  ;;  %863 = vmatprep.subr.bf16.mxu1 %v800_v47  ;;  %1432 = vperm.xlu1 %2124, %v1362_v22  }
  0xfd   : > { %v2011_v24 = vunpack.i.l.bf16 %v2862_v35  ;;  %v2012_v4 = vunpack.i.h.bf16 %v2862_v35 }
  0xff   : > { %864 = vmatpush1.bf16.msra.mxu1 %v799_v48  ;;  %v2036_v12 = vpop.permute.xlu1 %2035 }
 0x100   : > { %v2020_v41 = vpop.permute.xlu0 %2019  ;;  %1712 = vmatprep.subr.bf16.mxu1 %v2588_v53  ;;  %v2038_v16 = vunpack.i.h.bf16 %v2036_v12  ;;  %v2037_v19 = vunpack.i.l.bf16 %v2036_v12  ;;  %1442 = vperm.xlu1 %2124, %v1364_v44  }
 0x101   : > { %v2022_v50 = vunpack.i.h.bf16 %v2020_v41  ;;  %v2021_v51 = vunpack.i.l.bf16 %v2020_v41 }
 0x102   : > { %882 = vmatmul.mubr.bf16.vlgmr.msra.gmra.mrb[0].mxu1 %v2126_v52 }
 0x103   : > { %v604_v60 = vsel %vm603_vm2, %v2016_v46, %v2021_v51  ;;  %v605_v54 = vsel %vm603_vm2, %v2017_v45, %v2022_v50  ;;  %v620_v62 = vsel %vm603_vm2, %v2021_v51, %v2016_v46  ;;  %v621_v1 = vsel %vm603_vm2, %v2022_v50, %v2017_v45  ;;  %891 = vmatprep.mubr.bf16.mxu1 %v2284_v0  ;;  %v2046_v26 = vpop.permute.xlu1 %2045 }
 0x104   : > { %v2031_v2 = vpop.permute.xlu0 %2030  ;;  %v705_v3 = vsel %vm538_vm3, %v1996_v57, %v620_v62  ;;  %v707_v6 = vsel %vm538_vm3, %v1997_v56, %v621_v1  ;;  %v1140_v8 = vpack.c.bf16 %v605_v54, %v604_v60  ;;  %1720 = vmatpush1.bf16.msra.mxu1 %v2597_v55  ;;  %v2048_v35 = vunpack.i.h.bf16 %v2046_v26 }
 0x105   : > { %v1141_v13 = vpack.c.bf16 %v707_v6, %v705_v3  ;;  %v2033_v53 = vunpack.i.h.bf16 %v2031_v2  ;;  %v2032_v15 = vunpack.i.l.bf16 %v2031_v2  ;;  %1713 = vmatprep.subr.bf16.mxu1 %v2609_v61  ;;  %v2128_v61 = vld [vmem:[%s3219_s2 + $0x8] sm:$0xff]   ;;  %v2047_v36 = vunpack.i.l.bf16 %v2046_v26 }
 0x106   : > { %v2027_v45 = vunpack.i.l.bf16 %v2890_v58 }
 0x107   : > { %1204 = vmatprep.subr.bf16.mxu0 %v1141_v13  ;;  %v623_v55 = vsel %vm603_vm2, %v2038_v16, %v2033_v53  ;;  %v622_v10 = vsel %vm603_vm2, %v2037_v19, %v2032_v15  ;;  %v607_v17 = vsel %vm603_vm2, %v2033_v53, %v2038_v16  ;;  %v606_v23 = vsel %vm603_vm2, %v2032_v15, %v2037_v19  ;;  %v2056_v46 = vpop.permute.xlu1 %2055 }
 0x108   : > { %v2918_v27 = vpop.permute.xlu0 %2040  ;;  %1205 = vmatpush1.bf16.msra.mxu0 %v1140_v8  ;;  %v709_v34 = vsel %vm538_vm3, %v2011_v24, %v622_v10  ;;  %1721 = vmatpush1.bf16.msra.mxu1 %v2617_v63  ;;  %v711_v37 = vsel %vm538_vm3, %v2012_v4, %v623_v55  ;;  %v1142_v20 = vpack.c.bf16 %v607_v17, %v606_v23  ;;  %v2028_v63 = vunpack.i.h.bf16 %v2890_v58  ;;  %v2129_v58 = vld [vmem:[%s3219_s2 + $0x10] sm:$0xff]   ;;  %v2131_v55 = vld [vmem:[%s3219_s2 + $0x18] sm:$0xff]  }
 0x109   : > { %1714 = vmatprep.subr.bf16.mxu1 %v2628_v7  ;;  %v1143_v40 = vpack.c.bf16 %v711_v37, %v709_v34  ;;  %v2042_v1 = vunpack.i.l.bf16 %v2918_v27  ;;  %v2057_v4 = vunpack.i.l.bf16 %v2056_v46 }
 0x10a   : > { %892 = vmatmul.mubr.bf16.gmra.mrb[4].mxu1 %v2128_v61 }
 0x10b   : > { %1206 = vmatprep.subr.bf16.mxu0 %v1143_v40  ;;  %901 = vmatprep.mubr.bf16.mxu1 %v2284_v0  ;;  %v2066_v56 = vpop.permute.xlu1 %2065 }
 0x10c   : > { %v2051_v39 = vpop.permute.xlu0 %2050  ;;  %1207 = vmatpush1.bf16.msra.mxu0 %v1142_v20  ;;  %1722 = vmatpush1.bf16.msra.mxu1 %v2633_v11  ;;  %v2068_v54 = vunpack.i.h.bf16 %v2066_v56  ;;  %v2067_v62 = vunpack.i.l.bf16 %v2066_v56 }
 0x10d   : > { %v2053_v42 = vunpack.i.h.bf16 %v2051_v39  ;;  %v2052_v43 = vunpack.i.l.bf16 %v2051_v39  ;;  %1715 = vmatprep.subr.bf16.mxu1 %v2641_v18  ;;  %v2043_v18 = vunpack.i.h.bf16 %v2918_v27  ;;  %v2058_v27 = vunpack.i.h.bf16 %v2056_v46 }
 0x10f   : > { %v608_v7 = vsel %vm603_vm2, %v2047_v36, %v2052_v43  ;;  %v609_v47 = vsel %vm603_vm2, %v2048_v35, %v2053_v42  ;;  %v624_v48 = vsel %vm603_vm2, %v2052_v43, %v2047_v36  ;;  %v625_v49 = vsel %vm603_vm2, %v2053_v42, %v2048_v35  ;;  %v2076_v8 = vpop.permute.xlu1 %2075 }
 0x110   : > { %v2061_v41 = vpop.permute.xlu0 %2060  ;;  %v713_v50 = vsel %vm538_vm3, %v2027_v45, %v624_v48  ;;  %v715_v51 = vsel %vm538_vm3, %v2028_v63, %v625_v49  ;;  %v1144_v52 = vpack.c.bf16 %v609_v47, %v608_v7  ;;  %1723 = vmatpush1.bf16.msra.mxu1 %v2647_v21  ;;  %v2078_v12 = vunpack.i.h.bf16 %v2076_v8 }
 0x111   : > { %v1145_v57 = vpack.c.bf16 %v715_v51, %v713_v50  ;;  %v2063_v59 = vunpack.i.h.bf16 %v2061_v41  ;;  %v2062_v60 = vunpack.i.l.bf16 %v2061_v41  ;;  %1716 = vmatprep.subr.bf16.mxu1 %v2654_v25  ;;  %v2077_v13 = vunpack.i.l.bf16 %v2076_v8 }
 0x112   : > { %902 = vmatmul.mubr.bf16.gmra.mrb[8].mxu1 %v2129_v58 }
 0x113   : > { %1208 = vmatprep.subr.bf16.mxu0 %v1145_v57  ;;  %v627_v2 = vsel %vm603_vm2, %v2068_v54, %v2063_v59  ;;  %v626_v3 = vsel %vm603_vm2, %v2067_v62, %v2062_v60  ;;  %v611_v5 = vsel %vm603_vm2, %v2063_v59, %v2068_v54  ;;  %v610_v6 = vsel %vm603_vm2, %v2062_v60, %v2067_v62  ;;  %v2982_v25 = vpop.permute.xlu1 %2085 }
 0x114   : > { %v2962_v11 = vpop.permute.xlu0 %2070  ;;  %1209 = vmatpush1.bf16.msra.mxu0 %v1144_v52  ;;  %v717_v21 = vsel %vm538_vm3, %v2042_v1, %v626_v3  ;;  %v719_v53 = vsel %vm538_vm3, %v2043_v18, %v627_v2  ;;  %911 = vmatprep.mubr.bf16.mxu1 %v2284_v0  ;;  %v1146_v19 = vpack.c.bf16 %v611_v5, %v610_v6  ;;  %v2087_v57 = vunpack.i.l.bf16 %v2982_v25 }
 0x115   : > { %v1147_v16 = vpack.c.bf16 %v719_v53, %v717_v21  ;;  %1724 = vmatpush1.bf16.msra.mxu1 %v2657_v28  ;;  %v2072_v42 = vunpack.i.l.bf16 %v2962_v11  ;;  %v2088_v59 = vunpack.i.h.bf16 %v2982_v25  ;;  %v2136_v25 = vld [vmem:[%s3219_s2 + $0x80] sm:$0xff]  }
 0x116   : > { %1717 = vmatprep.subr.bf16.mxu1 %v2662_v30 }
 0x117   : > { %1210 = vmatprep.subr.bf16.mxu0 %v1147_v16  ;;  %v2096_v35 = vpop.permute.xlu1 %2095 }
 0x118   : > { %v2081_v15 = vpop.permute.xlu0 %2080  ;;  %1211 = vmatpush1.bf16.msra.mxu0 %v1146_v19  ;;  %v2098_v40 = vunpack.i.h.bf16 %v2096_v35  ;;  %v2097_v20 = vunpack.i.l.bf16 %v2096_v35  ;;  %v2148_v35 = vld [vmem:[%s3219_s2 + $0xb0] sm:$0xff]  }
 0x119   : > { %v2083_v22 = vunpack.i.h.bf16 %v2081_v15  ;;  %v2082_v24 = vunpack.i.l.bf16 %v2081_v15  ;;  %1725 = vmatpush1.bf16.msra.mxu1 %v2666_v31  ;;  %v2073_v31 = vunpack.i.h.bf16 %v2962_v11 }
 0x11a   : > { %1718 = vmatprep.subr.bf16.mxu1 %v2671_v32  ;;  %912 = vmatmul.mubr.bf16.gmra.mrb[12].mxu1 %v2131_v55  ;;  %v2139_v55 = vld [vmem:[%s3219_s2 + $0x38] sm:$0xff]  }
 0x11b   : > { %v612_v10 = vsel %vm603_vm2, %v2077_v13, %v2082_v24  ;;  %v613_v28 = vsel %vm603_vm2, %v2078_v12, %v2083_v22  ;;  %v628_v61 = vsel %vm603_vm2, %v2082_v24, %v2077_v13  ;;  %v629_v30 = vsel %vm603_vm2, %v2083_v22, %v2078_v12  ;;  %921 = vmatprep.mubr.bf16.mxu1 %v2284_v0  ;;  %v2106_v46 = vpop.permute.xlu1 %2105  ;;  %v2135_v12 = vld [vmem:[%s3219_s2 + $0x28] sm:$0xff]  }
 0x11c   : > { %v2091_v17 = vpop.permute.xlu0 %2090  ;;  %v721_v23 = vsel %vm538_vm3, %v2057_v4, %v628_v61  ;;  %v723_v26 = vsel %vm538_vm3, %v2058_v27, %v629_v30  ;;  %v1148_v34 = vpack.c.bf16 %v613_v28, %v612_v10  ;;  %v2108_v47 = vunpack.i.h.bf16 %v2106_v46  ;;  %v2140_v10 = vld [vmem:[%s3219_s2 + $0x90] sm:$0xff]   ;;  %v2141_v28 = vld [vmem:[%s3219_s2 + $0x60] sm:$0xff]   ;;  %v2142_v61 = vld [vmem:[%s3219_s2 + $0x98] sm:$0xff]  }
 0x11d   : > { %v1149_v36 = vpack.c.bf16 %v723_v26, %v721_v23  ;;  %v2093_v37 = vunpack.i.h.bf16 %v2091_v17  ;;  %v2092_v39 = vunpack.i.l.bf16 %v2091_v17  ;;  %1726 = vmatpush1.bf16.msra.mxu1 %v2675_v9  ;;  %v2133_v9 = vld [vmem:[%s3219_s2 + $0x20] sm:$0xff]   ;;  %v2107_v48 = vunpack.i.l.bf16 %v2106_v46  ;;  %v2143_v30 = vld [vmem:[%s3219_s2 + $0x68] sm:$0xff]   ;;  %v2145_v23 = vld [vmem:[%s3219_s2 + $0x70] sm:$0xff]  }
 0x11e   : > { %1719 = vmatprep.subr.bf16.mxu1 %v2681_v33  ;;  %v2144_v17 = vld [vmem:[%s3219_s2 + $0xa0] sm:$0xff]   ;;  %v2146_v26 = vld [vmem:[%s3219_s2 + $0xa8] sm:$0xff]  }
 0x11f   : > { %1212 = vmatprep.subr.bf16.mxu0 %v1149_v36  ;;  %v631_v32 = vsel %vm603_vm2, %v2098_v40, %v2093_v37  ;;  %v630_v44 = vsel %vm603_vm2, %v2097_v20, %v2092_v39  ;;  %v615_v63 = vsel %vm603_vm2, %v2093_v37, %v2098_v40  ;;  %v614_v45 = vsel %vm603_vm2, %v2092_v39, %v2097_v20  ;;  %v2116_v58 = vpop.permute.xlu1 %2115  ;;  %v2149_v36 = vld [vmem:[%s3219_s2 + $0xb8] sm:$0xff]  }
 0x120   : > { %v2101_v43 = vpop.permute.xlu0 %2100  ;;  %1213 = vmatpush1.bf16.msra.mxu0 %v1148_v34  ;;  %v725_v7 = vsel %vm538_vm3, %v2072_v42, %v630_v44  ;;  %v727_v49 = vsel %vm538_vm3, %v2073_v31, %v631_v32  ;;  %v1150_v51 = vpack.c.bf16 %v615_v63, %v614_v45  ;;  %v2118_v1 = vunpack.i.h.bf16 %v2116_v58  ;;  %v2147_v34 = vld [vmem:[%s3219_s2 + $0x78] sm:$0xff]  }
 0x121   : > { %v1151_v50 = vpack.c.bf16 %v727_v49, %v725_v7  ;;  %1727 = vmatpush1.bf16.msra.mxu1 %v2684_v14  ;;  %v2117_v11 = vunpack.i.l.bf16 %v2116_v58  ;;  %v2103_v6 = vunpack.i.h.bf16 %v2101_v43  ;;  %v2102_v8 = vunpack.i.l.bf16 %v2101_v43 }
 0x122   : > { %922 = vmatmul.mubr.bf16.gmra.mrb[16].mxu1 %v2133_v9 }
 0x123   : > { %1214 = vmatprep.subr.bf16.mxu0 %v1151_v50  ;;  %931 = vmatprep.mubr.bf16.mxu1 %v2284_v0 }
 0x124   : > { %v2111_v41 = vpop.permute.xlu0 %2110  ;;  %1215 = vmatpush1.bf16.msra.mxu0 %v1150_v51 }
 0x125   : > { %v2113_v52 = vunpack.i.h.bf16 %v2111_v41  ;;  %v2112_v56 = vunpack.i.l.bf16 %v2111_v41 }
 0x127   : > { %v617_v33 = vsel %vm603_vm2, %v2108_v47, %v2113_v52  ;;  %v633_v60 = vsel %vm603_vm2, %v2113_v52, %v2108_v47  ;;  %v632_v54 = vsel %vm603_vm2, %v2112_v56, %v2107_v48  ;;  %v616_v14 = vsel %vm603_vm2, %v2107_v48, %v2112_v56 }
 0x128   : > { %v2121_v62 = vpop.permute.xlu0 %2120  ;;  %v729_v18 = vsel %vm538_vm3, %v2087_v57, %v632_v54  ;;  %v731_v5 = vsel %vm538_vm3, %v2088_v59, %v633_v60  ;;  %v1152_v13 = vpack.c.bf16 %v617_v33, %v616_v14 }
 0x129   : > { %v2123_v2 = vunpack.i.h.bf16 %v2121_v62  ;;  %v2122_v3 = vunpack.i.l.bf16 %v2121_v62  ;;  %v1153_v21 = vpack.c.bf16 %v731_v5, %v729_v18 }
 0x12a   : > { %932 = vmatmul.mubr.bf16.gmra.mrb[20].mxu1 %v2135_v12 }
 0x12b   : > { %v635_v53 = vsel %vm603_vm2, %v2123_v2, %v2118_v1  ;;  %v634_v15 = vsel %vm603_vm2, %v2122_v3, %v2117_v11  ;;  %v619_v16 = vsel %vm603_vm2, %v2118_v1, %v2123_v2  ;;  %v618_v19 = vsel %vm603_vm2, %v2117_v11, %v2122_v3  ;;  %1216 = vmatprep.subr.bf16.mxu0 %v1153_v21 }
 0x12c   : > { %v733_v22 = vsel %vm538_vm3, %v2102_v8, %v634_v15  ;;  %v735_v24 = vsel %vm538_vm3, %v2103_v6, %v635_v53  ;;  %1217 = vmatpush1.bf16.msra.mxu0 %v1152_v13  ;;  %v1154_v4 = vpack.c.bf16 %v619_v16, %v618_v19  ;;  %941 = vmatprep.mubr.bf16.mxu1 %v2284_v0 }
 0x12d   : > { %v1155_v27 = vpack.c.bf16 %v735_v24, %v733_v22 }
 0x12f   : > { %1218 = vmatprep.subr.bf16.mxu0 %v1155_v27 }
 0x130   : > { %1219 = vmatpush1.bf16.msra.mxu0 %v1154_v4 }
 0x132   : > { %942 = vmatmul.mubr.bf16.gmra.mrb[24].mxu1 %v2137_v29 }
 0x133   : > { %1237 = vmatmul.mubr.bf16.vlgmr.msra.gmra.mrb[0].mxu0 %v2136_v25  ;;  %951 = vmatprep.mubr.bf16.mxu1 %v2284_v0 }
 0x134   : > { %1246 = vmatprep.mubr.bf16.mxu0 %v2284_v0 }
 0x13a   : > { %952 = vmatmul.mubr.bf16.gmra.mrb[28].mxu1 %v2139_v55 }
 0x13b   : > { %1247 = vmatmul.mubr.bf16.gmra.mrb[4].mxu0 %v2138_v38  ;;  %1082 = vmatprep.mubr.bf16.mxu1 %v2284_v0 }
 0x13c   : > { %1256 = vmatprep.mubr.bf16.mxu0 %v2284_v0 }
 0x142   : > { %1083 = vmatmul.mubr.bf16.vlgmr.msra.gmra.mrb[16].mxu1 %v2141_v28 }
 0x143   : > { %1257 = vmatmul.mubr.bf16.gmra.mrb[8].mxu0 %v2140_v10  ;;  %1092 = vmatprep.mubr.bf16.mxu1 %v2284_v0 }
 0x144   : > { %1266 = vmatprep.mubr.bf16.mxu0 %v2284_v0 }
 0x14a   : > { %1093 = vmatmul.mubr.bf16.gmra.mrb[20].mxu1 %v2143_v30 }
 0x14b   : > { %1267 = vmatmul.mubr.bf16.gmra.mrb[12].mxu0 %v2142_v61  ;;  %1102 = vmatprep.mubr.bf16.mxu1 %v2284_v0 }
 0x14c   : > { %1276 = vmatprep.mubr.bf16.mxu0 %v2284_v0 }
 0x152   : > { %1103 = vmatmul.mubr.bf16.gmra.mrb[24].mxu1 %v2145_v23 }
 0x153   : > { %1277 = vmatmul.mubr.bf16.gmra.mrb[16].mxu0 %v2144_v17  ;;  %1112 = vmatprep.mubr.bf16.mxu1 %v2284_v0 }
 0x154   : > { %1286 = vmatprep.mubr.bf16.mxu0 %v2284_v0 }
 0x15a   : > { %1113 = vmatmul.mubr.bf16.gmra.mrb[28].mxu1 %v2147_v34 }
 0x15b   : > { %1287 = vmatmul.mubr.bf16.gmra.mrb[20].mxu0 %v2146_v26 }
 0x15c   : > { %1296 = vmatprep.mubr.bf16.mxu0 %v2284_v0 }
 0x15f   : > { %v1368_v48 = vpop.permute.xlu1 %1367  ;;  %v1373_v56 = vpop.permute.xlu0 %1372 }
 0x163   : > { %1297 = vmatmul.mubr.bf16.gmra.mrb[24].mxu0 %v2148_v35  ;;  %v1378_v14 = vpop.permute.xlu1 %1377  ;;  %v1388_v19 = vpop.permute.xlu0 %1387 }
 0x164   : > { %1306 = vmatprep.mubr.bf16.mxu0 %v2284_v0 }
 0x167   : > { %v1383_v21 = vpop.permute.xlu1 %1382 }
 0x16b   : > { %1307 = vmatmul.mubr.bf16.gmra.mrb[28].mxu0 %v2149_v36  ;;  %v1393_v28 = vpop.permute.xlu1 %1392  ;;  %v1398_v36 = vpop.permute.xlu0 %1397 }
 0x1d5   : > { %v883_v37 = vpop.f32.mrb[0].mxu1 }
 0x1d6   : > { %v885_v39 = vpop.f32.mrb[1].mxu1 }
 0x1d7   : > { %v887_v40 = vpop.f32.mrb[2].mxu1 }
 0x1d8   : > { %v889_v20 = vpop.f32.mrb[3].mxu1 }
 0x1dd   : > { %v893_v42 = vpop.f32.mrb[4].mxu1 }
 0x1de   : > { %v895_v43 = vpop.f32.mrb[5].mxu1 }
 0x1df   : > { %v897_v31 = vpop.f32.mrb[6].mxu1 }
 0x1e0   : > { %v899_v32 = vpop.f32.mrb[7].mxu1 }
 0x1e5   : > { %v903_v44 = vpop.f32.mrb[8].mxu1 }
 0x1e6   : > { %v905_v63 = vpop.f32.mrb[9].mxu1 }
 0x1e7   : > { %v907_v45 = vpop.f32.mrb[10].mxu1 }
 0x1e8   : > { %v909_v46 = vpop.f32.mrb[11].mxu1 }
 0x1ed   : > { %v3107_v9 = vpop.f32.mrb[12].mxu1 }
 0x1ee   : > { %v3109_v0 = vpop.f32.mrb[13].mxu1 }
 0x1ef   : > { %v3111_v7 = vpop.f32.mrb[14].mxu1 }
 0x1f0   : > { %v3113_v47 = vpop.f32.mrb[15].mxu1 }
 0x206   : > { %v1238_v49 = vpop.f32.mrb[0].mxu0 }
 0x207   : > { %v1728_v41 = vadd.f32 %v1238_v49, %v883_v37  ;;  %v1240_v50 = vpop.f32.mrb[1].mxu0 }
 0x208   : > { %v1729_v51 = vadd.f32 %v1240_v50, %v885_v39  ;;  %v1242_v52 = vpop.f32.mrb[2].mxu0  ;;  %v1408_v50 = vpop.permute.xlu0 %1407 }
 0x209   : > { %v1445_v57 = vadd.f32 %v1728_v41, %v1368_v48  ;;  %v1730_v58 = vadd.f32 %v1242_v52, %v887_v40  ;;  %v1244_v59 = vpop.f32.mrb[3].mxu0 }
 0x20a   : > { %v1446_v33 = vadd.f32 %v1729_v51, %v1368_v48  ;;  %v1731_v60 = vadd.f32 %v1244_v59, %v889_v20 }
 0x20b   : > { %1477 = vst [vmem:[%s3117_s25] sm:$0xff] %v1445_v57  ;;  %v1447_v54 = vadd.f32 %v1730_v58, %v1373_v56 }
 0x20c   : > { %1478 = vst [vmem:[%s3117_s25 + $0x8] sm:$0xff] %v1446_v33  ;;  %v1448_v62 = vadd.f32 %v1731_v60, %v1373_v56 }
 0x20d   : > { %1479 = vst [vmem:[%s3117_s25 + $0x10] sm:$0xff] %v1447_v54 }
 0x20e   : > { %1480 = vst [vmem:[%s3117_s25 + $0x18] sm:$0xff] %v1448_v62  ;;  %v1248_v1 = vpop.f32.mrb[4].mxu0 }
 0x20f   : > { %v1732_v11 = vadd.f32 %v1248_v1, %v893_v42  ;;  %v1250_v18 = vpop.f32.mrb[5].mxu0 }
 0x210   : > { %v1733_v2 = vadd.f32 %v1250_v18, %v895_v43  ;;  %v1252_v3 = vpop.f32.mrb[6].mxu0 }
 0x211   : > { %v1449_v5 = vadd.f32 %v1732_v11, %v1378_v14  ;;  %v1734_v6 = vadd.f32 %v1252_v3, %v897_v31  ;;  %v1254_v8 = vpop.f32.mrb[7].mxu0  ;;  %v1418_v3 = vpop.permute.xlu0 %1417 }
 0x212   : > { %v1450_v12 = vadd.f32 %v1733_v2, %v1378_v14  ;;  %v1735_v13 = vadd.f32 %v1254_v8, %v899_v32 }
 0x213   : > { %1481 = vst [vmem:[%s3117_s25 + $0x20] sm:$0xff] %v1449_v5  ;;  %v1451_v53 = vadd.f32 %v1734_v6, %v1383_v21 }
 0x214   : > { %1482 = vst [vmem:[%s3117_s25 + $0x28] sm:$0xff] %v1450_v12  ;;  %v1452_v15 = vadd.f32 %v1735_v13, %v1383_v21 }
 0x215   : > { %1483 = vst [vmem:[%s3117_s25 + $0x30] sm:$0xff] %v1451_v53  ;;  %v1084_v4 = vpop.f32.mrb[16].mxu1 }
 0x216   : > { %1484 = vst [vmem:[%s3117_s25 + $0x38] sm:$0xff] %v1452_v15  ;;  %v1258_v16 = vpop.f32.mrb[8].mxu0  ;;  %v1086_v55 = vpop.f32.mrb[17].mxu1 }
 0x217   : > { %v1736_v22 = vadd.f32 %v1258_v16, %v903_v44  ;;  %v1260_v24 = vpop.f32.mrb[9].mxu0  ;;  %v1088_v17 = vpop.f32.mrb[18].mxu1 }
 0x218   : > { %v1737_v27 = vadd.f32 %v1260_v24, %v905_v63  ;;  %v1262_v25 = vpop.f32.mrb[10].mxu0  ;;  %v1090_v26 = vpop.f32.mrb[19].mxu1 }
 0x219   : > { %v1453_v29 = vadd.f32 %v1736_v22, %v1388_v19  ;;  %v1738_v38 = vadd.f32 %v1262_v25, %v907_v45  ;;  %v1264_v10 = vpop.f32.mrb[11].mxu0  ;;  %v1403_v63 = vpop.permute.xlu1 %1402 }
 0x21a   : > { %v1454_v61 = vadd.f32 %v1737_v27, %v1388_v19  ;;  %v1739_v30 = vadd.f32 %v1264_v10, %v909_v46 }
 0x21b   : > { %1485 = vst [vmem:[%s3117_s25 + $0x40] sm:$0xff] %v1453_v29  ;;  %v1455_v23 = vadd.f32 %v1738_v38, %v1393_v28 }
 0x21c   : > { %1486 = vst [vmem:[%s3117_s25 + $0x48] sm:$0xff] %v1454_v61  ;;  %v1456_v34 = vadd.f32 %v1739_v30, %v1393_v28  ;;  %v1428_v28 = vpop.permute.xlu0 %1427 }
 0x21d   : > { %1487 = vst [vmem:[%s3117_s25 + $0x50] sm:$0xff] %v1455_v23  ;;  %v1094_v20 = vpop.f32.mrb[20].mxu1  ;;  %v1413_v60 = vpop.permute.xlu1 %1412 }
 0x21e   : > { %1488 = vst [vmem:[%s3117_s25 + $0x58] sm:$0xff] %v1456_v34  ;;  %v1268_v35 = vpop.f32.mrb[12].mxu0  ;;  %v1096_v32 = vpop.f32.mrb[21].mxu1 }
 0x21f   : > { %v1740_v37 = vadd.f32 %v1268_v35, %v3107_v9  ;;  %v1270_v39 = vpop.f32.mrb[13].mxu0  ;;  %v1098_v48 = vpop.f32.mrb[22].mxu1 }
 0x220   : > { %v1741_v40 = vadd.f32 %v1270_v39, %v3109_v0  ;;  %v1272_v42 = vpop.f32.mrb[14].mxu0  ;;  %v1100_v49 = vpop.f32.mrb[23].mxu1 }
 0x221   : > { %v1457_v43 = vadd.f32 %v1740_v37, %v1398_v36  ;;  %v1742_v31 = vadd.f32 %v1272_v42, %v3111_v7  ;;  %v1274_v44 = vpop.f32.mrb[15].mxu0  ;;  %v1423_v19 = vpop.permute.xlu1 %1422 }
 0x222   : > { %v1458_v45 = vadd.f32 %v1741_v40, %v1398_v36  ;;  %v1743_v46 = vadd.f32 %v1274_v44, %v3113_v47 }
 0x223   : > { %1489 = vst [vmem:[%s3117_s25 + $0x60] sm:$0xff] %v1457_v43  ;;  %v1459_v9 = vadd.f32 %v1742_v31, %v1403_v63  ;;  %v1438_v43 = vpop.permute.xlu0 %1437 }
 0x224   : > { %1490 = vst [vmem:[%s3117_s25 + $0x68] sm:$0xff] %v1458_v45  ;;  %v1460_v41 = vadd.f32 %v1743_v46, %v1403_v63 }
 0x225   : > { %1491 = vst [vmem:[%s3117_s25 + $0x70] sm:$0xff] %v1459_v9  ;;  %v1104_v56 = vpop.f32.mrb[24].mxu1  ;;  %v1433_v34 = vpop.permute.xlu1 %1432 }
 0x226   : > { %1492 = vst [vmem:[%s3117_s25 + $0x78] sm:$0xff] %v1460_v41  ;;  %v1278_v0 = vpop.f32.mrb[16].mxu0  ;;  %v1106_v59 = vpop.f32.mrb[25].mxu1 }
 0x227   : > { %v1744_v51 = vadd.f32 %v1278_v0, %v1084_v4  ;;  %v1280_v7 = vpop.f32.mrb[17].mxu0  ;;  %v1108_v62 = vpop.f32.mrb[26].mxu1 }
 0x228   : > { %v1745_v52 = vadd.f32 %v1280_v7, %v1086_v55  ;;  %v1282_v57 = vpop.f32.mrb[18].mxu0  ;;  %v1110_v11 = vpop.f32.mrb[27].mxu1 }
 0x229   : > { %v1461_v47 = vadd.f32 %v1744_v51, %v1408_v50  ;;  %v1746_v58 = vadd.f32 %v1282_v57, %v1088_v17  ;;  %v1284_v33 = vpop.f32.mrb[19].mxu0  ;;  %v1443_v46 = vpop.permute.xlu1 %1442 }
 0x22a   : > { %v1462_v54 = vadd.f32 %v1745_v52, %v1408_v50  ;;  %v1747_v14 = vadd.f32 %v1284_v33, %v1090_v26 }
 0x22b   : > { %1493 = vst [vmem:[%s3117_s25 + $0x80] sm:$0xff] %v1461_v47  ;;  %v1463_v1 = vadd.f32 %v1746_v58, %v1413_v60 }
 0x22c   : > { %1494 = vst [vmem:[%s3117_s25 + $0x88] sm:$0xff] %v1462_v54  ;;  %v1464_v18 = vadd.f32 %v1747_v14, %v1413_v60 }
 0x22d   : > { %1495 = vst [vmem:[%s3117_s25 + $0x90] sm:$0xff] %v1463_v1  ;;  %v1114_v21 = vpop.f32.mrb[28].mxu1 }
 0x22e   : > { %1496 = vst [vmem:[%s3117_s25 + $0x98] sm:$0xff] %v1464_v18  ;;  %v1288_v2 = vpop.f32.mrb[20].mxu0  ;;  %v1116_v15 = vpop.f32.mrb[29].mxu1 }
 0x22f   : > { %v1748_v5 = vadd.f32 %v1288_v2, %v1094_v20  ;;  %v1290_v6 = vpop.f32.mrb[21].mxu0  ;;  %v1118_v27 = vpop.f32.mrb[30].mxu1 }
 0x230   : > { %v1749_v8 = vadd.f32 %v1290_v6, %v1096_v32  ;;  %v1292_v12 = vpop.f32.mrb[22].mxu0  ;;  %v1120_v25 = vpop.f32.mrb[31].mxu1 }
 0x231   : > { %v1465_v13 = vadd.f32 %v1748_v5, %v1418_v3  ;;  %v1750_v53 = vadd.f32 %v1292_v12, %v1098_v48  ;;  %v1294_v16 = vpop.f32.mrb[23].mxu0 }
 0x232   : > { %v1466_v22 = vadd.f32 %v1749_v8, %v1418_v3  ;;  %v1751_v24 = vadd.f32 %v1294_v16, %v1100_v49 }
 0x233   : > { %1497 = vst [vmem:[%s3117_s25 + $0xa0] sm:$0xff] %v1465_v13  ;;  %v1467_v4 = vadd.f32 %v1750_v53, %v1423_v19 }
 0x234   : > { %1498 = vst [vmem:[%s3117_s25 + $0xa8] sm:$0xff] %v1466_v22  ;;  %v1468_v29 = vadd.f32 %v1751_v24, %v1423_v19 }
 0x235   : > { %1499 = vst [vmem:[%s3117_s25 + $0xb0] sm:$0xff] %v1467_v4 }
 0x236   : > { %1500 = vst [vmem:[%s3117_s25 + $0xb8] sm:$0xff] %v1468_v29  ;;  %v1298_v38 = vpop.f32.mrb[24].mxu0 }
 0x237   : > { %v1752_v55 = vadd.f32 %v1298_v38, %v1104_v56  ;;  %v1300_v10 = vpop.f32.mrb[25].mxu0 }
 0x238   : > { %v1753_v61 = vadd.f32 %v1300_v10, %v1106_v59  ;;  %v1302_v30 = vpop.f32.mrb[26].mxu0 }
 0x239   : > { %v1469_v17 = vadd.f32 %v1752_v55, %v1428_v28  ;;  %v1754_v23 = vadd.f32 %v1302_v30, %v1108_v62  ;;  %v1304_v26 = vpop.f32.mrb[27].mxu0 }
 0x23a   : > { %v1470_v35 = vadd.f32 %v1753_v61, %v1428_v28  ;;  %v1755_v36 = vadd.f32 %v1304_v26, %v1110_v11 }
 0x23b   : > { %1501 = vst [vmem:[%s3117_s25 + $0xc0] sm:$0xff] %v1469_v17  ;;  %v1471_v37 = vadd.f32 %v1754_v23, %v1433_v34 }
 0x23c   : > { %1502 = vst [vmem:[%s3117_s25 + $0xc8] sm:$0xff] %v1470_v35  ;;  %v1472_v39 = vadd.f32 %v1755_v36, %v1433_v34 }
 0x23d   : > { %1503 = vst [vmem:[%s3117_s25 + $0xd0] sm:$0xff] %v1471_v37 }
 0x23e   : > { %1504 = vst [vmem:[%s3117_s25 + $0xd8] sm:$0xff] %v1472_v39  ;;  %v1308_v40 = vpop.f32.mrb[28].mxu0 }
 0x23f   : > { %v1756_v20 = vadd.f32 %v1308_v40, %v1114_v21  ;;  %v1310_v42 = vpop.f32.mrb[29].mxu0 }
 0x240   : > { %v1757_v31 = vadd.f32 %v1310_v42, %v1116_v15  ;;  %v1312_v32 = vpop.f32.mrb[30].mxu0 }
 0x241   : > { %v1473_v44 = vadd.f32 %v1756_v20, %v1438_v43  ;;  %v1758_v63 = vadd.f32 %v1312_v32, %v1118_v27  ;;  %v1314_v45 = vpop.f32.mrb[31].mxu0 }
 0x242   : > { %v1474_v48 = vadd.f32 %v1757_v31, %v1438_v43  ;;  %v1759_v9 = vadd.f32 %v1314_v45, %v1120_v25 }
 0x243   : > { %1505 = vst [vmem:[%s3117_s25 + $0xe0] sm:$0xff] %v1473_v44  ;;  %v1475_v49 = vadd.f32 %v1758_v63, %v1443_v46 }
 0x244   : > { %1506 = vst [vmem:[%s3117_s25 + $0xe8] sm:$0xff] %v1474_v48  ;;  %v1476_v41 = vadd.f32 %v1759_v9, %v1443_v46 }
 0x245   : > { %1507 = vst [vmem:[%s3117_s25 + $0xf0] sm:$0xff] %v1475_v49 }
 0x246   : > { %1508 = vst [vmem:[%s3117_s25 + $0xf8] sm:$0xff] %v1476_v41 }
 0x247   : > { %2193 = shalt.err (!%p2190_p7)
}
 0x248   : > { %s2194_s29 = scalar_lea.hbm %s3157_s23, 4096  ;;  %s2198_s12 = scalar_lea.hbm %s3221_s4, 32768 }
 0x249   : > { %p2195_p10 = scmp.ne.s32.totalorder %s3157_s23, %s2194_s29  ;;  %p2199_p5 = scmp.lt.u32.totalorder %s3157_s23, %s3221_s4 }
 0x24a   : > { %p2200_p9 = scmp.lt.u32.totalorder %s2198_s12, %s2194_s29  ;;  %p2202_p8 = scmp.lt.u32.totalorder %s2194_s29, %s3157_s23 }
 0x24b   : > { %p2196_p1 = pnand %p2195_p10, %p3231_p0 }
 0x24c   : > { %p2201_p12 = por %p2200_p9, %p2199_p5 }
 0x24d   : > { %p2197_p3 = pneg %p2196_p1 }
 0x24e   : > { %p2203_p11 = por %p2202_p8, %p2201_p12 }
 0x250   : > { %p2204_p13 = pnand %p2203_p11, %p2197_p3 }
 0x252   : > { %2207 = shalt.err (!%p2204_p13)
}
 0x253   : > { %s2289_s19 = smov 256   ;;  %s2290_s6 = smov 1024  }
 0x254   : > { %s2291_s28 = smov 16  }
 0x255   : > { %1794 = dma.vmem_to_hbm [thread:$0]  (%p3231_p0), %s3160_s18, 4096, %s3157_s23, %s1510_s30, %s2289_s19, %s2290_s6, %s2291_s28  }
 0x256 PF: > { %p1805_p2 = scmp.ge.s32.totalorder %s2278_s22, 2  ;;  %s1540_s27 = sand.u32 1, %s2250_s15  }
 0x257   : > { %p3232_p4 = scmp.ne.s32.totalorder %s3228_s8, 0  ;;  %s1541_s11 = scalar_lea.sflag [#allocation4], %s1540_s27 }
 0x259   : > { %p1801_p6 = pnand %p1805_p2, %p3232_p4 }
 0x25b   : > { %2245 = dma.done.wait (!%p1801_p6), %s1541_s11, 4096  }
 0x25c   : > { %2247 = vsyncadd (!%p1801_p6), %s1541_s11, 4294963200  ;;  %s20_s22 = sadd.s32 1, %s2278_s22   ;;  %s3233_s5 = sld [smem:[#allocation8_spill]] }
 0x25d   : > { %p17_p7 = scmp.ge.s32.totalorder %s20_s22, 10   ;;  %s3234_s15 = smov %s2254_s16 }
 0x25e   : > { %s3235_s16 = smov %s2258_s17  ;;  %s3236_s17 = smov %s2395_s10 }
 0x25f   : > { %s3237_s18 = smov %s2270_s20  ;;  %s3238_s19 = smov %s2274_s21 }
 0x260   : > { %s3240_s21 = smov %s3246_s26  ;;  %19 = sbr.rel (!%p17_p7) target bundleno = 7 (0x7), region = 86 }
 0x262   : > { %s3239_s20 = smov %s3233_s5 }
 0x267   :  { %1546 = vsyncpa [#allocation3], 1 }
 0x268   :  { %1548 = vsyncpa [#allocation3 + $0x1], 1 }
 0x269   :  { %1549 = vsyncpa [#allocation4], 1 }
 0x26a   :  { %1551 = vsyncpa [#allocation4 + $0x1], 1 }

</bundles_post_ra>
